<compile_context>
chip_gen: v7x
topology: tpu7x:2x2x1
jax: 0.10.0
libtpu: 0.0.40
codegen_flags: <defaults>
</compile_context>

<pallas_src>
import functools
import numpy as np

import jax
import jax.numpy as jnp
from jax.experimental import pallas as pl
from jax.experimental.pallas import tpu as pltpu

BN_EPS = 1e-5
ACT_DTYPE = jnp.bfloat16            # storage dtype for intermediate activations
_VMEM_LIMIT = 48 * 1024 * 1024      # > v5e/v6e scoped defaults, <= v7x physical


def _round_up(x, m):
    return (x + m - 1) // m * m


def _pick_tk(Kp, cap=1024):
    """Largest multiple-of-128 tile <= cap that divides Kp (Kp % 128 == 0)."""
    for t in range(cap, 0, -128):
        if Kp % t == 0:
            return t
    return 128


def _row_tile(M):
    """Row (sublane) tile for matmul kernels: prefer an exact divisor of M so
    the wrapper pad + slice passes are skipped."""
    best = 0
    for t in range(8, min(M, 512) + 1, 8):
        if M % t == 0:
            best = t
    if best >= 64 or (best > 0 and best == M):
        return best, M
    if M <= 512:
        t = _round_up(max(M, 1), 16)
        return t, t
    return 256, _round_up(M, 256)


def _col_tile(C):
    """Column (lane) tile: 256/128 multiples when possible, full dim otherwise."""
    if C % 256 == 0 and C >= 256:
        return 256, C
    if C % 128 == 0:
        return 128, C
    if C < 128:
        return C, C                       # full-dim lane block (e.g. 64 ch, 16 classes)
    return 128, _round_up(C, 128)


# --------------------------------------------------------------------------
# Matmul kernels with fused BN affine (+ ReLU, + optional residual)
# --------------------------------------------------------------------------
def _mm_kernel(x_ref, w_ref, s_ref, b_ref, o_ref, acc_ref, *, relu):
    @pl.when(pl.program_id(2) == 0)
    def _():
        acc_ref[...] = jnp.zeros_like(acc_ref)

    acc_ref[...] += jnp.dot(x_ref[...], w_ref[...],
                            preferred_element_type=jnp.float32)

    @pl.when(pl.program_id(2) == pl.num_programs(2) - 1)
    def _():
        y = acc_ref[...] * s_ref[...] + b_ref[...]
        if relu:
            y = jnp.maximum(y, 0.0)
        o_ref[...] = y.astype(o_ref.dtype)


def _mm_res_kernel(x_ref, w_ref, s_ref, b_ref, r_ref, o_ref, acc_ref, *, relu):
    @pl.when(pl.program_id(2) == 0)
    def _():
        acc_ref[...] = jnp.zeros_like(acc_ref)

    acc_ref[...] += jnp.dot(x_ref[...], w_ref[...],
                            preferred_element_type=jnp.float32)

    @pl.when(pl.program_id(2) == pl.num_programs(2) - 1)
    def _():
        y = acc_ref[...] * s_ref[...] + b_ref[...] + r_ref[...].astype(jnp.float32)
        if relu:
            y = jnp.maximum(y, 0.0)
        o_ref[...] = y.astype(o_ref.dtype)


def matmul_affine(x, w, scale, bias, relu=False, residual=None,
                  out_dtype=ACT_DTYPE):
    """act((x @ w) * scale + bias [+ residual]) with bf16 MXU operands."""
    M, K = x.shape
    _, N = w.shape

    tm, Mp = _row_tile(M)
    tn, Np = _col_tile(N)

    if K % 128 == 0:
        Kp = K
    elif K < 128 and K % 8 == 0:
        Kp = K
    else:
        Kp = _round_up(K, 128)
    tk = _pick_tk(Kp) if Kp % 128 == 0 else Kp

    xb = x.astype(jnp.bfloat16)
    wb = w.astype(jnp.bfloat16)
    if (Mp, Kp) != (M, K):
        xb = jnp.pad(xb, ((0, Mp - M), (0, Kp - K)))
    if (Kp, Np) != (K, N):
        wb = jnp.pad(wb, ((0, Kp - K), (0, Np - N)))
    sp = scale.astype(jnp.float32).reshape(1, N)
    bp = bias.astype(jnp.float32).reshape(1, N)
    if Np != N:
        sp = jnp.pad(sp, ((0, 0), (0, Np - N)))
        bp = jnp.pad(bp, ((0, 0), (0, Np - N)))

    inputs = [xb, wb, sp, bp]
    in_specs = [
        pl.BlockSpec((tm, tk), lambda i, j, k: (i, k)),
        pl.BlockSpec((tk, tn), lambda i, j, k: (k, j)),
        pl.BlockSpec((1, tn), lambda i, j, k: (0, j)),
        pl.BlockSpec((1, tn), lambda i, j, k: (0, j)),
    ]
    if residual is not None:
        rb = residual.astype(jnp.bfloat16)
        if (Mp, Np) != (M, N):
            rb = jnp.pad(rb, ((0, Mp - M), (0, Np - N)))
        inputs.append(rb)
        in_specs.append(pl.BlockSpec((tm, tn), lambda i, j, k: (i, j)))
        kernel = functools.partial(_mm_res_kernel, relu=relu)
    else:
        kernel = functools.partial(_mm_kernel, relu=relu)

    out = pl.pallas_call(
        kernel,
        out_shape=jax.ShapeDtypeStruct((Mp, Np), out_dtype),
        grid_spec=pltpu.PrefetchScalarGridSpec(
            num_scalar_prefetch=0,
            grid=(Mp // tm, Np // tn, Kp // tk),
            in_specs=in_specs,
            out_specs=pl.BlockSpec((tm, tn), lambda i, j, k: (i, j)),
            scratch_shapes=[pltpu.VMEM((tm, tn), jnp.float32)],
        ),
        compiler_params=pltpu.CompilerParams(
            dimension_semantics=("parallel", "parallel", "arbitrary"),
            vmem_limit_bytes=_VMEM_LIMIT),
    )(*inputs)
    if (Mp, Np) != (M, N):
        out = out[:M, :N]
    return out


# --------------------------------------------------------------------------
# Direct 3x3 / stride-1 / pad-1 conv kernel.
# One grid step = one whole zero-padded image flattened to (Hp*Wr, Cin); the
# 9 taps are applied in-kernel via static non-negative sublane rolls (circular
# wrap only ever lands on padded rows/cols that are sliced away afterwards).
# Weight slab (3, 3*Cin, tn) stays resident in VMEM across the image axis.
# --------------------------------------------------------------------------
def _conv3x3_kernel(x_ref, w_ref, s_ref, b_ref, o_ref, *, relu, Wr, Cin, fold_kj):
    M = x_ref.shape[0]
    # TODO(synk): bf16 sublane rolls would halve vreg pressure; f32 is the
    # known-safe lowering path, so the shifted operand is built in f32.
    x = x_ref[...].astype(jnp.float32)                  # (M, Cin)
    x_l = pltpu.roll(x, 1, axis=0)                      # value at flat p-1 (kj=0)
    x_r = pltpu.roll(x, M - 1, axis=0)                  # value at flat p+1 (kj=2)

    acc = jnp.zeros(o_ref.shape, jnp.float32)
    if fold_kj:
        # K = 3*Cin: fills the MXU depth for the narrow-channel stages.
        xcat = jnp.concatenate([x_l, x, x_r], axis=1)   # (M, 3*Cin)
        for ki in range(3):
            shift = ((1 - ki) * Wr) % M                 # static, non-negative
            xs = pltpu.roll(xcat, shift, axis=0) if shift else xcat
            acc = acc + jnp.dot(xs.astype(jnp.bfloat16), w_ref[ki],
                                preferred_element_type=jnp.float32)
    else:
        taps = (x_l, x, x_r)
        for ki in range(3):
            shift = ((1 - ki) * Wr) % M                 # static, non-negative
            for kj in range(3):
                xs = taps[kj]
                if shift:
                    xs = pltpu.roll(xs, shift, axis=0)
                wk = w_ref[ki, pl.ds(kj * Cin, Cin), :]
                acc = acc + jnp.dot(xs.astype(jnp.bfloat16), wk,
                                    preferred_element_type=jnp.float32)

    y = acc * s_ref[...] + b_ref[...]
    if relu:
        y = jnp.maximum(y, 0.0)
    o_ref[...] = y.astype(o_ref.dtype)


def conv3x3_s1_direct(x, w, scale, bias, relu):
    """x: (N,H,W,Cin), w: (3,3,Cin,Cout). Returns (N,H,W,Cout) bf16."""
    N, H, W, Cin = x.shape
    Cout = w.shape[-1]
    Hp = H + 2
    Wr = _round_up(W + 2, 16)        # padded row width (sublane granule)
    M = Hp * Wr                      # rows of one flattened padded image

    xp = jnp.pad(x.astype(ACT_DTYPE), ((0, 0), (1, 1), (1, Wr - W - 1), (0, 0)))
    xf = xp.reshape(N * M, Cin)

    tn, Np = _col_tile(Cout)
    wf = w.astype(jnp.bfloat16).reshape(3, 3 * Cin, Cout)
    sp = scale.astype(jnp.float32).reshape(1, Cout)
    bp = bias.astype(jnp.float32).reshape(1, Cout)
    if Np != Cout:
        wf = jnp.pad(wf, ((0, 0), (0, 0), (0, Np - Cout)))
        sp = jnp.pad(sp, ((0, 0), (0, Np - Cout)))
        bp = jnp.pad(bp, ((0, 0), (0, Np - Cout)))

    # Fold the kj taps along K only when the pieces are 128-lane aligned and
    # the MXU depth is otherwise underfilled.
    fold_kj = (Cin % 128 == 0) and (Cin <= 128)

    out = pl.pallas_call(
        functools.partial(_conv3x3_kernel, relu=relu, Wr=Wr, Cin=Cin,
                          fold_kj=fold_kj),
        out_shape=jax.ShapeDtypeStruct((N * M, Np), ACT_DTYPE),
        grid_spec=pltpu.PrefetchScalarGridSpec(
            num_scalar_prefetch=0,
            # Cout tiles outer, images inner -> weight slab index is constant
            # along the inner sweep and stays resident in VMEM.
            grid=(Np // tn, N),
            in_specs=[
                pl.BlockSpec((M, Cin), lambda j, i: (i, 0)),
                pl.BlockSpec((3, 3 * Cin, tn), lambda j, i: (0, 0, j)),
                pl.BlockSpec((1, tn), lambda j, i: (0, j)),
                pl.BlockSpec((1, tn), lambda j, i: (0, j)),
            ],
            out_specs=pl.BlockSpec((M, tn), lambda j, i: (i, j)),
        ),
        compiler_params=pltpu.CompilerParams(
            dimension_semantics=("parallel", "parallel"),
            vmem_limit_bytes=_VMEM_LIMIT),
    )(xf, wf, sp, bp)

    out = out.reshape(N, Hp, Wr, Np)[:, 1:H + 1, 1:W + 1, :Cout]
    return out


# --------------------------------------------------------------------------
# Convolution dispatcher
# --------------------------------------------------------------------------
def conv_bn(x, w, stride, pad, scale, bias, relu, shortcut=None):
    """x: NHWC (bf16), w: (KH, KW, Cin, Cout)."""
    N, H, W, Cin = x.shape
    KH, KW, _, Cout = w.shape

    if (KH, KW) == (3, 3) and stride == 1 and pad == 1 and shortcut is None:
        return conv3x3_s1_direct(x, w, scale, bias, relu)

    Ho = (H + 2 * pad - KH) // stride + 1
    Wo = (W + 2 * pad - KW) // stride + 1
    if pad > 0:
        x = jnp.pad(x, ((0, 0), (pad, pad), (pad, pad), (0, 0)))
    if KH == 1 and KW == 1:
        patches = x[:, ::stride, ::stride, :][:, :Ho, :Wo, :]
    else:
        # TODO(synk): the 7x7 stem conv and the three stride-2 3x3 convs still
        # materialize im2col patches in XLA; small fraction of total traffic.
        cols = []
        for ki in range(KH):
            for kj in range(KW):
                cols.append(x[:, ki:ki + stride * (Ho - 1) + 1:stride,
                              kj:kj + stride * (Wo - 1) + 1:stride, :])
        patches = jnp.concatenate(cols, axis=-1)
    xm = patches.reshape(N * Ho * Wo, KH * KW * Cin)
    wm = w.reshape(KH * KW * Cin, Cout)
    res = shortcut.reshape(N * Ho * Wo, Cout) if shortcut is not None else None
    y = matmul_affine(xm, wm, scale, bias, relu=relu, residual=res)
    return y.reshape(N, Ho, Wo, Cout)


# --------------------------------------------------------------------------
# Max pool 3x3 / stride 2 / pad 1: direct kernel (separable 3-tap max with
# in-register rolls over one whole padded image per grid step).
# --------------------------------------------------------------------------
def _maxpool3x3_kernel(x_ref, o_ref, *, Wp):
    M = x_ref.shape[0]
    x = x_ref[...].astype(jnp.float32)
    h = jnp.maximum(jnp.maximum(pltpu.roll(x, 1, axis=0), x),
                    pltpu.roll(x, M - 1, axis=0))
    m = jnp.maximum(jnp.maximum(pltpu.roll(h, Wp, axis=0), h),
                    pltpu.roll(h, (M - Wp) % M, axis=0))
    o_ref[...] = m.astype(o_ref.dtype)


def maxpool_3x3_s2(x):
    N, H, W, C = x.shape
    Ho = (H - 1) // 2 + 1
    Wo = (W - 1) // 2 + 1
    Hp = H + 2
    Wp = _round_up(W + 2, 8)
    xp = jnp.pad(x, ((0, 0), (1, 1), (1, Wp - W - 1), (0, 0)),
                 constant_values=-jnp.inf)
    xf = xp.reshape(N * Hp * Wp, C)

    spec = pl.BlockSpec((Hp * Wp, C), lambda n: (n, 0))
    out = pl.pallas_call(
        functools.partial(_maxpool3x3_kernel, Wp=Wp),
        out_shape=jax.ShapeDtypeStruct((N * Hp * Wp, C), x.dtype),
        grid_spec=pltpu.PrefetchScalarGridSpec(
            num_scalar_prefetch=0,
            grid=(N,),
            in_specs=[spec],
            out_specs=spec,
        ),
        compiler_params=pltpu.CompilerParams(
            dimension_semantics=("parallel",),
            vmem_limit_bytes=_VMEM_LIMIT),
    )(xf)
    out = out.reshape(N, Hp, Wp, C)[:, 1:2 * Ho:2, 1:2 * Wo:2, :]
    return out


# --------------------------------------------------------------------------
# Global average pool / softmax
# --------------------------------------------------------------------------
def _avgpool_kernel(x_ref, o_ref, *, inv_hw):
    s = jnp.sum(x_ref[...].astype(jnp.float32), axis=1, keepdims=True)
    o_ref[...] = s * inv_hw


def global_avgpool(x):
    """AdaptiveAvgPool2d((1,1)): mean over H*W, one image per grid step."""
    N, H, W, C = x.shape
    HW = H * W
    x3 = x.reshape(N, HW, C)
    out = pl.pallas_call(
        functools.partial(_avgpool_kernel, inv_hw=1.0 / HW),
        out_shape=jax.ShapeDtypeStruct((N, 1, C), jnp.float32),
        grid_spec=pltpu.PrefetchScalarGridSpec(
            num_scalar_prefetch=0,
            grid=(N,),
            in_specs=[pl.BlockSpec((1, HW, C), lambda n: (n, 0, 0))],
            out_specs=pl.BlockSpec((1, 1, C), lambda n: (n, 0, 0)),
        ),
        compiler_params=pltpu.CompilerParams(
            dimension_semantics=("parallel",),
            vmem_limit_bytes=_VMEM_LIMIT),
    )(x3)
    return out.reshape(N, C)


def _softmax_kernel(x_ref, o_ref):
    x = x_ref[...]
    m = jnp.max(x, axis=-1, keepdims=True)
    e = jnp.exp(x - m)
    o_ref[...] = e / jnp.sum(e, axis=-1, keepdims=True)


def softmax(x):
    N, C = x.shape
    tm, Np = _row_tile(N)
    Cp = C if (C < 128 or C % 128 == 0) else _round_up(C, 128)
    xp = x.astype(jnp.float32)
    if (Np, Cp) != (N, C):
        xp = jnp.pad(xp, ((0, Np - N), (0, Cp - C)), constant_values=-1e30)
    out = pl.pallas_call(
        _softmax_kernel,
        out_shape=jax.ShapeDtypeStruct((Np, Cp), jnp.float32),
        grid_spec=pltpu.PrefetchScalarGridSpec(
            num_scalar_prefetch=0,
            grid=(Np // tm,),
            in_specs=[pl.BlockSpec((tm, Cp), lambda i: (i, 0))],
            out_specs=pl.BlockSpec((tm, Cp), lambda i: (i, 0)),
        ),
        compiler_params=pltpu.CompilerParams(
            dimension_semantics=("parallel",),
            vmem_limit_bytes=_VMEM_LIMIT),
    )(xp)
    return out[:N, :C]


# --------------------------------------------------------------------------
# Parameters (deterministic, matching the PyTorch _init_weights)
# --------------------------------------------------------------------------
def _make_conv(key, kh, kw, cin, cout):
    # kaiming_normal_, mode='fan_out', nonlinearity='relu'
    std = float(np.sqrt(2.0 / (cout * kh * kw)))
    return jax.random.normal(key, (kh, kw, cin, cout), jnp.float32) * std


def _bn_scale_bias(c):
    # eval-mode BN with gamma=1, beta=0, running_mean=0, running_var=1
    scale = jnp.full((c,), 1.0 / np.sqrt(1.0 + BN_EPS), jnp.float32)
    bias = jnp.zeros((c,), jnp.float32)
    return scale, bias


def make_resnet50_params(key, num_classes):
    keys = iter(jax.random.split(key, 256))
    params = {
        'conv1': _make_conv(next(keys), 7, 7, 3, 64),
        'bn1': _bn_scale_bias(64),
    }
    stage_cfg = [  # (layer_num, in_channels, channels_expansion, stride_expansion)
        (3, 64, 4, 1),
        (4, 256, 2, 2),
        (6, 512, 2, 2),
        (3, 1024, 2, 2),
    ]
    stages = []
    for (ln, in_ch, ce, se) in stage_cfg:
        out_ch = in_ch * ce
        mid = out_ch // 4
        blocks = []
        for li in range(ln):
            proj = (li == 0)
            bin_ch = in_ch if proj else out_ch
            stride = se if proj else 1
            blk = {
                'w1': _make_conv(next(keys), 1, 1, bin_ch, mid),
                'bn1': _bn_scale_bias(mid),
                'w2': _make_conv(next(keys), 3, 3, mid, mid),
                'bn2': _bn_scale_bias(mid),
                'w3': _make_conv(next(keys), 1, 1, mid, out_ch),
                'bn3': _bn_scale_bias(out_ch),
                'stride': stride,
                'proj': proj,
            }
            if proj:
                blk['wp'] = _make_conv(next(keys), 1, 1, bin_ch, out_ch)
                blk['bnp'] = _bn_scale_bias(out_ch)
            blocks.append(blk)
        stages.append(blocks)
    params['stages'] = stages

    k1, k2 = jax.random.split(next(keys))
    bound = 1.0 / np.sqrt(2048.0)
    params['fc_w'] = jax.random.uniform(k1, (2048, num_classes), jnp.float32,
                                        -bound, bound)
    params['fc_b'] = jax.random.uniform(k2, (num_classes,), jnp.float32,
                                        -bound, bound)
    return params


# --------------------------------------------------------------------------
# Forward pass
# --------------------------------------------------------------------------
def bottleneck(x, blk):
    s1, b1 = blk['bn1']
    s2, b2 = blk['bn2']
    s3, b3 = blk['bn3']
    out = conv_bn(x, blk['w1'], 1, 0, s1, b1, relu=True)
    out = conv_bn(out, blk['w2'], blk['stride'], 1, s2, b2, relu=True)
    if blk['proj']:
        sp, bp = blk['bnp']
        shortcut = conv_bn(x, blk['wp'], blk['stride'], 0, sp, bp, relu=False)
    else:
        shortcut = x
    # third 1x1 conv with the residual add + ReLU fused into the epilogue
    out = conv_bn(out, blk['w3'], 1, 0, s3, b3, relu=True, shortcut=shortcut)
    return out


def resnet_forward(params, x_nchw):
    # input is NCHW (PyTorch convention); converted to NHWC + bf16 internally.
    x = jnp.transpose(x_nchw, (0, 2, 3, 1)).astype(ACT_DTYPE)
    s1, b1 = params['bn1']
    x = conv_bn(x, params['conv1'], 2, 3, s1, b1, relu=True)
    x = maxpool_3x3_s2(x)
    for blocks in params['stages']:
        for blk in blocks:
            x = bottleneck(x, blk)
    pooled = global_avgpool(x)                      # (N, 2048) f32
    num_classes = params['fc_w'].shape[1]
    ones = jnp.ones((num_classes,), jnp.float32)
    logits = matmul_affine(pooled, params['fc_w'], ones, params['fc_b'],
                           relu=False, out_dtype=jnp.float32)
    return softmax(logits)                          # (N, num_classes)


# --------------------------------------------------------------------------
if __name__ == "__main__":
    key = jax.random.PRNGKey(0)
    k_params, k_input = jax.random.split(key)

    NUM_CLASSES = 16  # small num_classes (constructor arg of the module)
    params = make_resnet50_params(k_params, NUM_CLASSES)

    # Small NCHW input consistent with the module (3 input channels).
    x = jax.random.normal(k_input, (2, 3, 32, 32), jnp.float32)

    probs = resnet_forward(params, x)
    probs = jax.block_until_ready(probs)

    assert probs.shape == (2, NUM_CLASSES)
    assert bool(jnp.all(jnp.isfinite(probs)))
    assert bool(jnp.allclose(jnp.sum(probs, axis=1), 1.0, atol=1e-4))
    print("KERNEL_OK")
</pallas_src>

<mosaic_0001>
module attributes {stable_mosaic.version = 11 : i64} {
  func.func @_mm_kernel(%arg0: i32, %arg1: i32, %arg2: i32, %arg3: memref<512x256xbf16, #tpu.memory_space<vmem>>, %arg4: memref<256x64xbf16, #tpu.memory_space<vmem>>, %arg5: memref<1x64xf32, #tpu.memory_space<vmem>>, %arg6: memref<1x64xf32, #tpu.memory_space<vmem>>, %arg7: memref<512x64xbf16, #tpu.memory_space<vmem>>, %arg8: memref<512x64xf32, #tpu.memory_space<vmem>>) attributes {dimension_semantics = [#tpu.dimension_semantics<parallel>, #tpu.dimension_semantics<parallel>, #tpu.dimension_semantics<arbitrary>], iteration_bounds = array<i64: 1, 1, 1>, scalar_prefetch = 0 : i64, scratch_operands = 1 : i64, tpu.core_type = #tpu.core_type<tc>, window_params = [{transform_indices = @transform_0, window_bounds = array<i64: 512, 256>}, {transform_indices = @transform_1, window_bounds = array<i64: 256, 64>}, {transform_indices = @transform_2, window_bounds = array<i64: 1, 64>}, {transform_indices = @transform_3, window_bounds = array<i64: 1, 64>}, {transform_indices = @transform_4, window_bounds = array<i64: 512, 64>}]} {
    %c0_i32 = arith.constant 0 : i32
    %0 = arith.cmpi eq, %arg2, %c0_i32 : i32
    %1 = arith.extui %0 : i1 to i32
    %c0_i32_0 = arith.constant 0 : i32
    %2 = arith.cmpi ne, %1, %c0_i32_0 : i32
    scf.if %2 {
      %cst_10 = arith.constant 0.000000e+00 : f32
      %12 = vector.broadcast %cst_10 : f32 to vector<512x64xf32>
      %c0_11 = arith.constant 0 : index
      %c0_12 = arith.constant 0 : index
      %13 = vector.load %arg8[%c0_11, %c0_12] : memref<512x64xf32, #tpu.memory_space<vmem>>, vector<512x64xf32>
      tpu.vector_store %arg8[%c0_11, %c0_12], %12 {strides = array<i32>} : memref<512x64xf32, #tpu.memory_space<vmem>>, vector<512x64xf32>,
    } else {
    }
    %c0 = arith.constant 0 : index
    %c0_1 = arith.constant 0 : index
    %3 = vector.load %arg8[%c0, %c0_1] : memref<512x64xf32, #tpu.memory_space<vmem>>, vector<512x64xf32>
    %c0_2 = arith.constant 0 : index
    %c0_3 = arith.constant 0 : index
    %4 = vector.load %arg3[%c0_2, %c0_3] : memref<512x256xbf16, #tpu.memory_space<vmem>>, vector<512x256xbf16>
    %c0_4 = arith.constant 0 : index
    %c0_5 = arith.constant 0 : index
    %5 = vector.load %arg4[%c0_4, %c0_5] : memref<256x64xbf16, #tpu.memory_space<vmem>>, vector<256x64xbf16>
    %cst = arith.constant dense<0.000000e+00> : vector<512x64xf32>
    %6 = tpu.matmul %4, %5, %cst {dimension_numbers = #tpu.dot_dimension_numbers<[1], [0], [0], [1], [0, 0, 1, 1], [], []>} : vector<512x256xbf16>, vector<256x64xbf16>, vector<512x64xf32> -> vector<512x64xf32>
    %7 = arith.addf %3, %6 : vector<512x64xf32>
    %c0_6 = arith.constant 0 : index
    %c0_7 = arith.constant 0 : index
    %8 = vector.load %arg8[%c0_6, %c0_7] : memref<512x64xf32, #tpu.memory_space<vmem>>, vector<512x64xf32>
    tpu.vector_store %arg8[%c0_6, %c0_7], %7 {strides = array<i32>} : memref<512x64xf32, #tpu.memory_space<vmem>>, vector<512x64xf32>,
    %c0_i32_8 = arith.constant 0 : i32
    %9 = arith.cmpi eq, %arg2, %c0_i32_8 : i32
    %10 = arith.extui %9 : i1 to i32
    %c0_i32_9 = arith.constant 0 : i32
    %11 = arith.cmpi ne, %10, %c0_i32_9 : i32
    scf.if %11 {
      %c0_10 = arith.constant 0 : index
      %c0_11 = arith.constant 0 : index
      %12 = vector.load %arg8[%c0_10, %c0_11] : memref<512x64xf32, #tpu.memory_space<vmem>>, vector<512x64xf32>
      %c0_12 = arith.constant 0 : index
      %c0_13 = arith.constant 0 : index
      %13 = vector.load %arg5[%c0_12, %c0_13] : memref<1x64xf32, #tpu.memory_space<vmem>>, vector<1x64xf32>
      %14 = vector.broadcast %13 : vector<1x64xf32> to vector<512x64xf32>
      %15 = arith.mulf %12, %14 : vector<512x64xf32>
      %c0_14 = arith.constant 0 : index
      %c0_15 = arith.constant 0 : index
      %16 = vector.load %arg6[%c0_14, %c0_15] : memref<1x64xf32, #tpu.memory_space<vmem>>, vector<1x64xf32>
      %17 = vector.broadcast %16 : vector<1x64xf32> to vector<512x64xf32>
      %18 = arith.addf %15, %17 : vector<512x64xf32>
      %cst_16 = arith.constant 0.000000e+00 : f32
      %19 = vector.broadcast %cst_16 : f32 to vector<512x64xf32>
      %20 = arith.maximumf %18, %19 : vector<512x64xf32>
      %21 = arith.truncf %20 : vector<512x64xf32> to vector<512x64xbf16>
      %c0_17 = arith.constant 0 : index
      %c0_18 = arith.constant 0 : index
      %22 = vector.load %arg7[%c0_17, %c0_18] : memref<512x64xbf16, #tpu.memory_space<vmem>>, vector<512x64xbf16>
      tpu.vector_store %arg7[%c0_17, %c0_18], %21 {strides = array<i32>} : memref<512x64xbf16, #tpu.memory_space<vmem>>, vector<512x64xbf16>,
    } else {
    }
    return
  }
  func.func @transform_0(%arg0: i32, %arg1: i32, %arg2: i32) -> (i32, i32) {
    %c0_i32 = arith.constant 0 : i32
    return %arg0, %arg2 : i32, i32
  }
  func.func @transform_1(%arg0: i32, %arg1: i32, %arg2: i32) -> (i32, i32) {
    %c0_i32 = arith.constant 0 : i32
    return %arg2, %arg1 : i32, i32
  }
  func.func @transform_2(%arg0: i32, %arg1: i32, %arg2: i32) -> (i32, i32) {
    %c0_i32 = arith.constant 0 : i32
    %c0_i32_0 = arith.constant 0 : i32
    return %c0_i32, %arg1 : i32, i32
  }
  func.func @transform_3(%arg0: i32, %arg1: i32, %arg2: i32) -> (i32, i32) {
    %c0_i32 = arith.constant 0 : i32
    %c0_i32_0 = arith.constant 0 : i32
    return %c0_i32, %arg1 : i32, i32
  }
  func.func @transform_4(%arg0: i32, %arg1: i32, %arg2: i32) -> (i32, i32) {
    %c0_i32 = arith.constant 0 : i32
    return %arg0, %arg1 : i32, i32
  }
}

</mosaic_0001>

<bundles_post_ra>
// kernel: tpu_custom_call.1
= control target key start
LH: loop header
LB: loop body
LE: loop exit
PB: predicated region body
PF: predicated region fallthrough
CT: control target
= control target key end

     0   :  { %9 = vsyncpa [#allocation4], 0  ;;  %s2079_s15 = smov [#allocation3]   ;;  %s2801_s0 = inlined_call_operand.hbm [shape: bf16[512,256], index: 0, kind: input, shape index: {}]   ;;  %s2802_s1 = inlined_call_operand.vmem [shape: bf16[256,64], index: 1, kind: input, shape index: {}]   ;;  %s2803_s2 = inlined_call_operand.vmem [shape: f32[1,64], index: 2, kind: input, shape index: {}]   ;;  %s2804_s3 = inlined_call_operand.vmem [shape: f32[1,64], index: 3, kind: input, shape index: {}]   ;;  %s2805_s4 = inlined_call_operand.vmem [shape: bf16[512,64], index: 4, kind: output, shape index: {}]  }
   0x1   :  { %s15_s16 = sshll.u32 %s2079_s15, 4  ;;  %s2055_s19 = scalar_lea.hbm %s2801_s0, 8192  ;;  %s16_s16 = int_to_ptr.vmem [resolvable:$true] %s15_s16 }
   0x2   :  { %p2056_p0 = scmp.ne.s32.totalorder %s2801_s0, %s2055_s19  ;;  %p2059_p1 = scmp.lt.u32.totalorder %s2055_s19, %s2801_s0 }
   0x4   :  { %p2061_p2 = pnand %p2059_p1, %p2056_p0 }
   0x6   :  { %2064 = shalt.err (!%p2061_p2)
}
   0x7   :  { %s2065_s24 = scalar_lea.vmem %s16_s16, 8192  ;;  %p2070_p4 = scmp.lt.s32.totalorder %s16_s16, %s16_s16 }
   0x8   :  { %p2066_p3 = scmp.ne.s32.totalorder %s16_s16, %s2065_s24  ;;  %p2071_p5 = scmp.lt.s32.totalorder %s2065_s24, %s2065_s24 }
   0xa   :  { %p2072_p6 = por %p2071_p5, %p2070_p4 }
   0xc   :  { %p2073_p7 = pnand %p2072_p6, %p2066_p3 }
   0xe   :  { %2076 = shalt.err (!%p2073_p7)
}
   0xf   :  { %s2080_s25 = smov 128   ;;  %s2081_s26 = smov 8  }
  0x10   :  { %21 = dma.hbm_to_vmem [thread:$0]  %s2801_s0, 8192, %s16_s16, [#allocation4], %s2080_s25, %s2080_s25, %s2081_s26  }
  0x11   :  { %2077 = dma.done.wait [#allocation4], 8192  }
  0x12   :  { %2078 = vsyncadd [#allocation4], 4294959104  ;;  %v2082_v0 = vmov 0   ;;  %v1941_v1 = vld [vmem:[%s2802_s1] sm:$0xff]   ;;  %v1942_v2 = vld [vmem:[%s2802_s1 + $0x8] sm:$0xff]   ;;  %vm36_vm0 = vcmask 523264  }
  0x13   :  { %677 = vmatprep.subr.bf16.mxu0 %v2082_v0  ;;  %1904 = vmatprep.subr.bf16.mxu1 %v2082_v0  ;;  %v1943_v3 = vld [vmem:[%s2802_s1 + $0x10] sm:$0xff]   ;;  %v1944_v4 = vld [vmem:[%s2802_s1 + $0x18] sm:$0xff]   ;;  %v1945_v5 = vld [vmem:[%s2802_s1 + $0x20] sm:$0xff]   ;;  %v2083_v19 = vmov 0.0   ;;  %vm1624_vm1 = vcmask 519168  }
  0x14   :  { %678 = vmatpush1.bf16.msra.mxu0 %v1941_v1  ;;  %1920 = vmatpush1.bf16.msra.mxu1 %v1941_v1  ;;  %v1959_v6 = vld [vmem:[#allocation3 + $0x4] ss:$8 sps:$4 sm:$0xff]   ;;  %v1947_v9 = vld [vmem:[%s2802_s1 + $0x30] sm:$0xff]   ;;  %v1948_v10 = vld [vmem:[%s2802_s1 + $0x38] sm:$0xff]   ;;  %37 = vst.msk [vmem:[#allocation2] sm:$0xff] %vm36_vm0, %v2083_v19 }
  0x15   :  { %679 = vmatprep.subr.bf16.mxu0 %v2082_v0  ;;  %1905 = vmatprep.subr.bf16.mxu1 %v2082_v0  ;;  %v1946_v7 = vld [vmem:[%s2802_s1 + $0x28] sm:$0xff]   ;;  %v1949_v11 = vld [vmem:[%s2802_s1 + $0x40] sm:$0xff]   ;;  %v1951_v13 = vld [vmem:[%s2802_s1 + $0x50] sm:$0xff]   ;;  %38 = vst.msk [vmem:[#allocation2 + $0x8] sm:$0xff] %vm36_vm0, %v2083_v19 }
  0x16   :  { %v1962_v8 = vld [vmem:[#allocation3 + $0x104] ss:$8 sps:$4 sm:$0xff]   ;;  %709 = vmatprep.mubr.bf16.mxu0 %v1959_v6  ;;  %v1952_v14 = vld [vmem:[%s2802_s1 + $0x58] sm:$0xff]   ;;  %v1955_v17 = vld [vmem:[%s2802_s1 + $0x70] sm:$0xff]   ;;  %39 = vst.msk [vmem:[#allocation2 + $0x10] sm:$0xff] %vm36_vm0, %v2083_v19 }
  0x17   :  { %837 = vmatprep.mubr.bf16.mxu1 %v1962_v8  ;;  %v1950_v12 = vld [vmem:[%s2802_s1 + $0x48] sm:$0xff]   ;;  %v1953_v15 = vld [vmem:[%s2802_s1 + $0x60] sm:$0xff]   ;;  %v2199_v18 = vld [vmem:[%s2802_s1 + $0x78] sm:$0xff]   ;;  %40 = vst.msk [vmem:[#allocation2 + $0x18] sm:$0xff] %vm36_vm0, %v2083_v19 }
  0x18   :  { %680 = vmatpush1.bf16.msra.mxu0 %v1942_v2  ;;  %1921 = vmatpush1.bf16.msra.mxu1 %v1942_v2  ;;  %v1954_v16 = vld [vmem:[%s2802_s1 + $0x68] sm:$0xff]   ;;  %41 = vst.msk [vmem:[#allocation2 + $0x20] sm:$0xff] %vm36_vm0, %v2083_v19  ;;  %42 = vst.msk [vmem:[#allocation2 + $0x28] sm:$0xff] %vm36_vm0, %v2083_v19  ;;  %v1963_v22 = vld [vmem:[#allocation3 + $0x14] ss:$8 sps:$4 sm:$0xff]  }
  0x19   :  { %681 = vmatprep.subr.bf16.mxu0 %v2082_v0  ;;  %1906 = vmatprep.subr.bf16.mxu1 %v2082_v0  ;;  %43 = vst.msk [vmem:[#allocation2 + $0x30] sm:$0xff] %vm36_vm0, %v2083_v19  ;;  %44 = vst.msk [vmem:[#allocation2 + $0x38] sm:$0xff] %vm36_vm0, %v2083_v19  ;;  %v1957_v20 = vld [vmem:[#allocation3] ss:$8 sps:$4 sm:$0xff]   ;;  %v1965_v23 = vld [vmem:[#allocation3 + $0x114] ss:$8 sps:$4 sm:$0xff]  }
  0x1a   :  { %45 = vst.msk [vmem:[#allocation2 + $0x40] sm:$0xff] %vm36_vm0, %v2083_v19  ;;  %46 = vst.msk [vmem:[#allocation2 + $0x48] sm:$0xff] %vm36_vm0, %v2083_v19  ;;  %v1960_v21 = vld [vmem:[#allocation3 + $0x100] ss:$8 sps:$4 sm:$0xff]   ;;  %v1967_v24 = vld [vmem:[#allocation3 + $0x10] ss:$8 sps:$4 sm:$0xff]  }
  0x1b   :  { %47 = vst.msk [vmem:[#allocation2 + $0x50] sm:$0xff] %vm36_vm0, %v2083_v19  ;;  %48 = vst.msk [vmem:[#allocation2 + $0x58] sm:$0xff] %vm36_vm0, %v2083_v19  ;;  %v1968_v25 = vld [vmem:[#allocation3 + $0x110] ss:$8 sps:$4 sm:$0xff]   ;;  %v1969_v26 = vld [vmem:[#allocation3 + $0x24] ss:$8 sps:$4 sm:$0xff]  }
  0x1c   :  { %682 = vmatpush1.bf16.msra.mxu0 %v1943_v3  ;;  %1922 = vmatpush1.bf16.msra.mxu1 %v1943_v3  ;;  %49 = vst.msk [vmem:[#allocation2 + $0x60] sm:$0xff] %vm36_vm0, %v2083_v19  ;;  %50 = vst.msk [vmem:[#allocation2 + $0x68] sm:$0xff] %vm36_vm0, %v2083_v19  ;;  %v1971_v27 = vld [vmem:[#allocation3 + $0x124] ss:$8 sps:$4 sm:$0xff]   ;;  %v1973_v28 = vld [vmem:[#allocation3 + $0x20] ss:$8 sps:$4 sm:$0xff]  }
  0x1d   :  { %683 = vmatprep.subr.bf16.mxu0 %v2082_v0  ;;  %1907 = vmatprep.subr.bf16.mxu1 %v2082_v0  ;;  %51 = vst.msk [vmem:[#allocation2 + $0x70] sm:$0xff] %vm36_vm0, %v2083_v19  ;;  %52 = vst.msk [vmem:[#allocation2 + $0x78] sm:$0xff] %vm36_vm0, %v2083_v19  ;;  %v1974_v29 = vld [vmem:[#allocation3 + $0x120] ss:$8 sps:$4 sm:$0xff]   ;;  %v1975_v30 = vld [vmem:[#allocation3 + $0x34] ss:$8 sps:$4 sm:$0xff]  }
  0x1e   :  { %53 = vst.msk [vmem:[#allocation2 + $0x80] sm:$0xff] %vm36_vm0, %v2083_v19  ;;  %54 = vst.msk [vmem:[#allocation2 + $0x88] sm:$0xff] %vm36_vm0, %v2083_v19  ;;  %v1977_v31 = vld [vmem:[#allocation3 + $0x134] ss:$8 sps:$4 sm:$0xff]   ;;  %v1979_v32 = vld [vmem:[#allocation3 + $0x30] ss:$8 sps:$4 sm:$0xff]  }
  0x1f   :  { %55 = vst.msk [vmem:[#allocation2 + $0x90] sm:$0xff] %vm36_vm0, %v2083_v19  ;;  %56 = vst.msk [vmem:[#allocation2 + $0x98] sm:$0xff] %vm36_vm0, %v2083_v19  ;;  %v1980_v33 = vld [vmem:[#allocation3 + $0x130] ss:$8 sps:$4 sm:$0xff]   ;;  %v1981_v34 = vld [vmem:[#allocation3 + $0x44] ss:$8 sps:$4 sm:$0xff]  }
  0x20   :  { %684 = vmatpush1.bf16.msra.mxu0 %v1944_v4  ;;  %1923 = vmatpush1.bf16.msra.mxu1 %v1944_v4  ;;  %57 = vst.msk [vmem:[#allocation2 + $0xa0] sm:$0xff] %vm36_vm0, %v2083_v19  ;;  %58 = vst.msk [vmem:[#allocation2 + $0xa8] sm:$0xff] %vm36_vm0, %v2083_v19  ;;  %v1983_v35 = vld [vmem:[#allocation3 + $0x144] ss:$8 sps:$4 sm:$0xff]   ;;  %v1985_v36 = vld [vmem:[#allocation3 + $0x40] ss:$8 sps:$4 sm:$0xff]  }
  0x21   :  { %685 = vmatprep.subr.bf16.mxu0 %v2082_v0  ;;  %1908 = vmatprep.subr.bf16.mxu1 %v2082_v0  ;;  %59 = vst.msk [vmem:[#allocation2 + $0xb0] sm:$0xff] %vm36_vm0, %v2083_v19  ;;  %60 = vst.msk [vmem:[#allocation2 + $0xb8] sm:$0xff] %vm36_vm0, %v2083_v19  ;;  %v1986_v37 = vld [vmem:[#allocation3 + $0x140] ss:$8 sps:$4 sm:$0xff]   ;;  %v1987_v38 = vld [vmem:[#allocation3 + $0x54] ss:$8 sps:$4 sm:$0xff]  }
  0x22   :  { %61 = vst.msk [vmem:[#allocation2 + $0xc0] sm:$0xff] %vm36_vm0, %v2083_v19  ;;  %62 = vst.msk [vmem:[#allocation2 + $0xc8] sm:$0xff] %vm36_vm0, %v2083_v19  ;;  %v1989_v39 = vld [vmem:[#allocation3 + $0x154] ss:$8 sps:$4 sm:$0xff]   ;;  %v1991_v40 = vld [vmem:[#allocation3 + $0x50] ss:$8 sps:$4 sm:$0xff]  }
  0x23   :  { %63 = vst.msk [vmem:[#allocation2 + $0xd0] sm:$0xff] %vm36_vm0, %v2083_v19  ;;  %64 = vst.msk [vmem:[#allocation2 + $0xd8] sm:$0xff] %vm36_vm0, %v2083_v19  ;;  %v1992_v41 = vld [vmem:[#allocation3 + $0x150] ss:$8 sps:$4 sm:$0xff]   ;;  %v1993_v42 = vld [vmem:[#allocation3 + $0x64] ss:$8 sps:$4 sm:$0xff]  }
  0x24   :  { %686 = vmatpush1.bf16.msra.mxu0 %v1945_v5  ;;  %1924 = vmatpush1.bf16.msra.mxu1 %v1945_v5  ;;  %65 = vst.msk [vmem:[#allocation2 + $0xe0] sm:$0xff] %vm36_vm0, %v2083_v19  ;;  %66 = vst.msk [vmem:[#allocation2 + $0xe8] sm:$0xff] %vm36_vm0, %v2083_v19  ;;  %v1995_v43 = vld [vmem:[#allocation3 + $0x164] ss:$8 sps:$4 sm:$0xff]   ;;  %v1997_v44 = vld [vmem:[#allocation3 + $0x60] ss:$8 sps:$4 sm:$0xff]  }
  0x25   :  { %687 = vmatprep.subr.bf16.mxu0 %v2082_v0  ;;  %1909 = vmatprep.subr.bf16.mxu1 %v2082_v0  ;;  %67 = vst.msk [vmem:[#allocation2 + $0xf0] sm:$0xff] %vm36_vm0, %v2083_v19  ;;  %68 = vst.msk [vmem:[#allocation2 + $0xf8] sm:$0xff] %vm36_vm0, %v2083_v19  ;;  %v1998_v45 = vld [vmem:[#allocation3 + $0x160] ss:$8 sps:$4 sm:$0xff]   ;;  %v1999_v46 = vld [vmem:[#allocation3 + $0x74] ss:$8 sps:$4 sm:$0xff]  }
  0x26   :  { %69 = vst.msk [vmem:[#allocation2 + $0x100] sm:$0xff] %vm36_vm0, %v2083_v19  ;;  %70 = vst.msk [vmem:[#allocation2 + $0x108] sm:$0xff] %vm36_vm0, %v2083_v19  ;;  %v2001_v47 = vld [vmem:[#allocation3 + $0x174] ss:$8 sps:$4 sm:$0xff]   ;;  %v2003_v48 = vld [vmem:[#allocation3 + $0x70] ss:$8 sps:$4 sm:$0xff]  }
  0x27   :  { %71 = vst.msk [vmem:[#allocation2 + $0x110] sm:$0xff] %vm36_vm0, %v2083_v19  ;;  %72 = vst.msk [vmem:[#allocation2 + $0x118] sm:$0xff] %vm36_vm0, %v2083_v19  ;;  %v2004_v49 = vld [vmem:[#allocation3 + $0x170] ss:$8 sps:$4 sm:$0xff]   ;;  %v2005_v50 = vld [vmem:[#allocation3 + $0x84] ss:$8 sps:$4 sm:$0xff]  }
  0x28   :  { %688 = vmatpush1.bf16.msra.mxu0 %v1946_v7  ;;  %1925 = vmatpush1.bf16.msra.mxu1 %v1946_v7  ;;  %73 = vst.msk [vmem:[#allocation2 + $0x120] sm:$0xff] %vm36_vm0, %v2083_v19  ;;  %74 = vst.msk [vmem:[#allocation2 + $0x128] sm:$0xff] %vm36_vm0, %v2083_v19  ;;  %v2007_v51 = vld [vmem:[#allocation3 + $0x184] ss:$8 sps:$4 sm:$0xff]   ;;  %v2009_v52 = vld [vmem:[#allocation3 + $0x80] ss:$8 sps:$4 sm:$0xff]  }
  0x29   :  { %689 = vmatprep.subr.bf16.mxu0 %v2082_v0  ;;  %1910 = vmatprep.subr.bf16.mxu1 %v2082_v0  ;;  %75 = vst.msk [vmem:[#allocation2 + $0x130] sm:$0xff] %vm36_vm0, %v2083_v19  ;;  %76 = vst.msk [vmem:[#allocation2 + $0x138] sm:$0xff] %vm36_vm0, %v2083_v19  ;;  %v2010_v53 = vld [vmem:[#allocation3 + $0x180] ss:$8 sps:$4 sm:$0xff]   ;;  %v2011_v54 = vld [vmem:[#allocation3 + $0x94] ss:$8 sps:$4 sm:$0xff]  }
  0x2a   :  { %77 = vst.msk [vmem:[#allocation2 + $0x140] sm:$0xff] %vm36_vm0, %v2083_v19  ;;  %78 = vst.msk [vmem:[#allocation2 + $0x148] sm:$0xff] %vm36_vm0, %v2083_v19  ;;  %v2013_v55 = vld [vmem:[#allocation3 + $0x194] ss:$8 sps:$4 sm:$0xff]   ;;  %v2015_v56 = vld [vmem:[#allocation3 + $0x90] ss:$8 sps:$4 sm:$0xff]  }
  0x2b   :  { %79 = vst.msk [vmem:[#allocation2 + $0x150] sm:$0xff] %vm36_vm0, %v2083_v19  ;;  %80 = vst.msk [vmem:[#allocation2 + $0x158] sm:$0xff] %vm36_vm0, %v2083_v19  ;;  %v2016_v57 = vld [vmem:[#allocation3 + $0x190] ss:$8 sps:$4 sm:$0xff]   ;;  %v2017_v58 = vld [vmem:[#allocation3 + $0xa4] ss:$8 sps:$4 sm:$0xff]  }
  0x2c   :  { %690 = vmatpush1.bf16.msra.mxu0 %v1947_v9  ;;  %1926 = vmatpush1.bf16.msra.mxu1 %v1947_v9  ;;  %81 = vst.msk [vmem:[#allocation2 + $0x160] sm:$0xff] %vm36_vm0, %v2083_v19  ;;  %82 = vst.msk [vmem:[#allocation2 + $0x168] sm:$0xff] %vm36_vm0, %v2083_v19  ;;  %v2019_v59 = vld [vmem:[#allocation3 + $0x1a4] ss:$8 sps:$4 sm:$0xff]   ;;  %v2021_v60 = vld [vmem:[#allocation3 + $0xa0] ss:$8 sps:$4 sm:$0xff]  }
  0x2d   :  { %691 = vmatprep.subr.bf16.mxu0 %v2082_v0  ;;  %1911 = vmatprep.subr.bf16.mxu1 %v2082_v0  ;;  %83 = vst.msk [vmem:[#allocation2 + $0x170] sm:$0xff] %vm36_vm0, %v2083_v19  ;;  %84 = vst.msk [vmem:[#allocation2 + $0x178] sm:$0xff] %vm36_vm0, %v2083_v19  ;;  %v2022_v61 = vld [vmem:[#allocation3 + $0x1a0] ss:$8 sps:$4 sm:$0xff]   ;;  %v2023_v62 = vld [vmem:[#allocation3 + $0xb4] ss:$8 sps:$4 sm:$0xff]  }
  0x2e   :  { %85 = vst.msk [vmem:[#allocation2 + $0x180] sm:$0xff] %vm36_vm0, %v2083_v19  ;;  %86 = vst.msk [vmem:[#allocation2 + $0x188] sm:$0xff] %vm36_vm0, %v2083_v19  ;;  %v2025_v63 = vld [vmem:[#allocation3 + $0x1b4] ss:$8 sps:$4 sm:$0xff]   ;;  %v2028_v1 = vld [vmem:[#allocation3 + $0x1b0] ss:$8 sps:$4 sm:$0xff]  }
  0x2f   :  { %87 = vst.msk [vmem:[#allocation2 + $0x190] sm:$0xff] %vm36_vm0, %v2083_v19  ;;  %88 = vst.msk [vmem:[#allocation2 + $0x198] sm:$0xff] %vm36_vm0, %v2083_v19  ;;  %v2029_v2 = vld [vmem:[#allocation3 + $0xc4] ss:$8 sps:$4 sm:$0xff]   ;;  %v2033_v4 = vld [vmem:[#allocation3 + $0xc0] ss:$8 sps:$4 sm:$0xff]  }
  0x30   :  { %692 = vmatpush1.bf16.msra.mxu0 %v1948_v10  ;;  %1927 = vmatpush1.bf16.msra.mxu1 %v1948_v10  ;;  %89 = vst.msk [vmem:[#allocation2 + $0x1a0] sm:$0xff] %vm36_vm0, %v2083_v19  ;;  %90 = vst.msk [vmem:[#allocation2 + $0x1a8] sm:$0xff] %vm36_vm0, %v2083_v19  ;;  %v2031_v3 = vld [vmem:[#allocation3 + $0x1c4] ss:$8 sps:$4 sm:$0xff]   ;;  %v2034_v5 = vld [vmem:[#allocation3 + $0x1c0] ss:$8 sps:$4 sm:$0xff]  }
  0x31   :  { %693 = vmatprep.subr.bf16.mxu0 %v2082_v0  ;;  %1912 = vmatprep.subr.bf16.mxu1 %v2082_v0  ;;  %91 = vst.msk [vmem:[#allocation2 + $0x1b0] sm:$0xff] %vm36_vm0, %v2083_v19  ;;  %92 = vst.msk [vmem:[#allocation2 + $0x1b8] sm:$0xff] %vm36_vm0, %v2083_v19  ;;  %v2035_v6 = vld [vmem:[#allocation3 + $0xd4] ss:$8 sps:$4 sm:$0xff]   ;;  %v2039_v8 = vld [vmem:[#allocation3 + $0xd0] ss:$8 sps:$4 sm:$0xff]  }
  0x32   :  { %93 = vst.msk [vmem:[#allocation2 + $0x1c0] sm:$0xff] %vm36_vm0, %v2083_v19  ;;  %94 = vst.msk [vmem:[#allocation2 + $0x1c8] sm:$0xff] %vm36_vm0, %v2083_v19  ;;  %v2037_v7 = vld [vmem:[#allocation3 + $0x1d4] ss:$8 sps:$4 sm:$0xff]   ;;  %v2040_v9 = vld [vmem:[#allocation3 + $0x1d0] ss:$8 sps:$4 sm:$0xff]  }
  0x33   :  { %95 = vst.msk [vmem:[#allocation2 + $0x1d0] sm:$0xff] %vm36_vm0, %v2083_v19  ;;  %96 = vst.msk [vmem:[#allocation2 + $0x1d8] sm:$0xff] %vm36_vm0, %v2083_v19  ;;  %v2041_v10 = vld [vmem:[#allocation3 + $0xe4] ss:$8 sps:$4 sm:$0xff]  }
  0x34   :  { %694 = vmatpush1.bf16.msra.mxu0 %v1949_v11  ;;  %1928 = vmatpush1.bf16.msra.mxu1 %v1949_v11  ;;  %97 = vst.msk [vmem:[#allocation2 + $0x1e0] sm:$0xff] %vm36_vm0, %v2083_v19  ;;  %98 = vst.msk [vmem:[#allocation2 + $0x1e8] sm:$0xff] %vm36_vm0, %v2083_v19  ;;  %v2043_v11 = vld [vmem:[#allocation3 + $0x1e4] ss:$8 sps:$4 sm:$0xff]  }
  0x35   :  { %695 = vmatprep.subr.bf16.mxu0 %v2082_v0  ;;  %1913 = vmatprep.subr.bf16.mxu1 %v2082_v0  ;;  %99 = vst.msk [vmem:[#allocation2 + $0x1f0] sm:$0xff] %vm36_vm0, %v2083_v19  ;;  %100 = vst.msk [vmem:[#allocation2 + $0x1f8] sm:$0xff] %vm36_vm0, %v2083_v19  ;;  %v133_v19 = vld [vmem:[#allocation2 + $0x100] sm:$0xff] }
  0x38   :  { %696 = vmatpush1.bf16.msra.mxu0 %v1950_v12  ;;  %1929 = vmatpush1.bf16.msra.mxu1 %v1950_v12  ;;  %v2045_v12 = vld [vmem:[#allocation3 + $0xe0] ss:$8 sps:$4 sm:$0xff]  }
  0x39   :  { %697 = vmatprep.subr.bf16.mxu0 %v2082_v0  ;;  %1914 = vmatprep.subr.bf16.mxu1 %v2082_v0 }
  0x3c   :  { %698 = vmatpush1.bf16.msra.mxu0 %v1951_v13  ;;  %1930 = vmatpush1.bf16.msra.mxu1 %v1951_v13  ;;  %v2046_v13 = vld [vmem:[#allocation3 + $0x1e0] ss:$8 sps:$4 sm:$0xff]  }
  0x3d   :  { %699 = vmatprep.subr.bf16.mxu0 %v2082_v0  ;;  %1915 = vmatprep.subr.bf16.mxu1 %v2082_v0 }
  0x40   :  { %700 = vmatpush1.bf16.msra.mxu0 %v1952_v14  ;;  %1931 = vmatpush1.bf16.msra.mxu1 %v1952_v14  ;;  %v2047_v14 = vld [vmem:[#allocation3 + $0xf4] ss:$8 sps:$4 sm:$0xff]  }
  0x41   :  { %701 = vmatprep.subr.bf16.mxu0 %v2082_v0  ;;  %1916 = vmatprep.subr.bf16.mxu1 %v2082_v0 }
  0x44   :  { %702 = vmatpush1.bf16.msra.mxu0 %v1953_v15  ;;  %1932 = vmatpush1.bf16.msra.mxu1 %v1953_v15  ;;  %v2049_v15 = vld [vmem:[#allocation3 + $0x1f4] ss:$8 sps:$4 sm:$0xff]  }
  0x45   :  { %703 = vmatprep.subr.bf16.mxu0 %v2082_v0  ;;  %1917 = vmatprep.subr.bf16.mxu1 %v2082_v0 }
  0x48   :  { %704 = vmatpush1.bf16.msra.mxu0 %v1954_v16  ;;  %1933 = vmatpush1.bf16.msra.mxu1 %v1954_v16  ;;  %v2051_v16 = vld [vmem:[#allocation3 + $0xf0] ss:$8 sps:$4 sm:$0xff]  }
  0x49   :  { %705 = vmatprep.subr.bf16.mxu0 %v2082_v0  ;;  %1918 = vmatprep.subr.bf16.mxu1 %v2082_v0 }
  0x4c   :  { %706 = vmatpush1.bf16.msra.mxu0 %v1955_v17  ;;  %1934 = vmatpush1.bf16.msra.mxu1 %v1955_v17  ;;  %v2052_v17 = vld [vmem:[#allocation3 + $0x1f0] ss:$8 sps:$4 sm:$0xff]  }
  0x4d   :  { %707 = vmatprep.subr.bf16.mxu0 %v2082_v0  ;;  %1919 = vmatprep.subr.bf16.mxu1 %v2082_v0  ;;  %v2027_v0 = vld [vmem:[#allocation3 + $0xb0] ss:$8 sps:$4 sm:$0xff]  }
  0x50   :  { %708 = vmatpush1.bf16.msra.mxu0 %v2199_v18  ;;  %1935 = vmatpush1.bf16.msra.mxu1 %v2199_v18  ;;  %v101_v18 = vld [vmem:[#allocation2] sm:$0xff] }
  0x53   :  { %710 = vmatmul.mubr.bf16.vlgmr.msra.gmra.mrb[0].mxu0 %v1957_v20  ;;  %838 = vmatmul.mubr.bf16.vlgmr.msra.gmra.mrb[0].mxu1 %v1960_v21 }
  0x54   :  { %717 = vmatprep.mubr.bf16.mxu0 %v1963_v22  ;;  %845 = vmatprep.mubr.bf16.mxu1 %v1965_v23  ;;  %v102_v22 = vld [vmem:[#allocation2 + $0x8] sm:$0xff] }
  0x55   :  { %v134_v23 = vld [vmem:[#allocation2 + $0x108] sm:$0xff] }
  0x5b   :  { %718 = vmatmul.mubr.bf16.gmra.mrb[4].mxu0 %v1967_v24  ;;  %846 = vmatmul.mubr.bf16.gmra.mrb[4].mxu1 %v1968_v25 }
  0x5c   :  { %725 = vmatprep.mubr.bf16.mxu0 %v1969_v26  ;;  %853 = vmatprep.mubr.bf16.mxu1 %v1971_v27 }
  0x63   :  { %726 = vmatmul.mubr.bf16.gmra.mrb[8].mxu0 %v1973_v28  ;;  %854 = vmatmul.mubr.bf16.gmra.mrb[8].mxu1 %v1974_v29 }
  0x64   :  { %733 = vmatprep.mubr.bf16.mxu0 %v1975_v30  ;;  %861 = vmatprep.mubr.bf16.mxu1 %v1977_v31 }
  0x6b   :  { %734 = vmatmul.mubr.bf16.gmra.mrb[12].mxu0 %v1979_v32  ;;  %862 = vmatmul.mubr.bf16.gmra.mrb[12].mxu1 %v1980_v33 }
  0x6c   :  { %741 = vmatprep.mubr.bf16.mxu0 %v1981_v34  ;;  %869 = vmatprep.mubr.bf16.mxu1 %v1983_v35  ;;  %v103_v34 = vld [vmem:[#allocation2 + $0x10] sm:$0xff] }
  0x6d   :  { %v135_v35 = vld [vmem:[#allocation2 + $0x110] sm:$0xff] }
  0x73   :  { %742 = vmatmul.mubr.bf16.gmra.mrb[16].mxu0 %v1985_v36  ;;  %870 = vmatmul.mubr.bf16.gmra.mrb[16].mxu1 %v1986_v37  ;;  %v2340_v36 = vld [vmem:[%s2803_s2] ss:$0 sm:$0xff] }
  0x74   :  { %749 = vmatprep.mubr.bf16.mxu0 %v1987_v38  ;;  %877 = vmatprep.mubr.bf16.mxu1 %v1989_v39  ;;  %v104_v39 = vld [vmem:[#allocation2 + $0x18] sm:$0xff] }
  0x7b   :  { %750 = vmatmul.mubr.bf16.gmra.mrb[20].mxu0 %v1991_v40  ;;  %878 = vmatmul.mubr.bf16.gmra.mrb[20].mxu1 %v1992_v41  ;;  %v136_v40 = vld [vmem:[#allocation2 + $0x118] sm:$0xff] }
  0x7c   :  { %757 = vmatprep.mubr.bf16.mxu0 %v1993_v42  ;;  %885 = vmatprep.mubr.bf16.mxu1 %v1995_v43 }
  0x83   :  { %758 = vmatmul.mubr.bf16.gmra.mrb[24].mxu0 %v1997_v44  ;;  %886 = vmatmul.mubr.bf16.gmra.mrb[24].mxu1 %v1998_v45 }
  0x84   :  { %765 = vmatprep.mubr.bf16.mxu0 %v1999_v46  ;;  %893 = vmatprep.mubr.bf16.mxu1 %v2001_v47  ;;  %v2345_v46 = vld [vmem:[%s2804_s3] ss:$0 sm:$0xff] }
  0x8b   :  { %766 = vmatmul.mubr.bf16.gmra.mrb[28].mxu0 %v2003_v48  ;;  %894 = vmatmul.mubr.bf16.gmra.mrb[28].mxu1 %v2004_v49 }
  0x8c   :  { %773 = vmatprep.mubr.bf16.mxu0 %v2005_v50  ;;  %901 = vmatprep.mubr.bf16.mxu1 %v2007_v51 }
  0x93   :  { %774 = vmatmul.mubr.bf16.gmra.mrb[32].mxu0 %v2009_v52  ;;  %902 = vmatmul.mubr.bf16.gmra.mrb[32].mxu1 %v2010_v53 }
  0x94   :  { %781 = vmatprep.mubr.bf16.mxu0 %v2011_v54  ;;  %909 = vmatprep.mubr.bf16.mxu1 %v2013_v55 }
  0x9b   :  { %782 = vmatmul.mubr.bf16.gmra.mrb[36].mxu0 %v2015_v56  ;;  %910 = vmatmul.mubr.bf16.gmra.mrb[36].mxu1 %v2016_v57 }
  0x9c   :  { %789 = vmatprep.mubr.bf16.mxu0 %v2017_v58  ;;  %917 = vmatprep.mubr.bf16.mxu1 %v2019_v59 }
  0xa3   :  { %790 = vmatmul.mubr.bf16.gmra.mrb[40].mxu0 %v2021_v60  ;;  %918 = vmatmul.mubr.bf16.gmra.mrb[40].mxu1 %v2022_v61 }
  0xa4   :  { %797 = vmatprep.mubr.bf16.mxu0 %v2023_v62  ;;  %925 = vmatprep.mubr.bf16.mxu1 %v2025_v63 }
  0xab   :  { %798 = vmatmul.mubr.bf16.gmra.mrb[44].mxu0 %v2027_v0  ;;  %926 = vmatmul.mubr.bf16.gmra.mrb[44].mxu1 %v2028_v1 }
  0xac   :  { %805 = vmatprep.mubr.bf16.mxu0 %v2029_v2  ;;  %933 = vmatprep.mubr.bf16.mxu1 %v2031_v3  ;;  %v105_v2 = vld [vmem:[#allocation2 + $0x20] sm:$0xff] }
  0xad   :  { %v137_v3 = vld [vmem:[#allocation2 + $0x120] sm:$0xff] }
  0xb3   :  { %806 = vmatmul.mubr.bf16.gmra.mrb[48].mxu0 %v2033_v4  ;;  %934 = vmatmul.mubr.bf16.gmra.mrb[48].mxu1 %v2034_v5 }
  0xb4   :  { %813 = vmatprep.mubr.bf16.mxu0 %v2035_v6  ;;  %941 = vmatprep.mubr.bf16.mxu1 %v2037_v7 }
  0xbb   :  { %814 = vmatmul.mubr.bf16.gmra.mrb[52].mxu0 %v2039_v8  ;;  %942 = vmatmul.mubr.bf16.gmra.mrb[52].mxu1 %v2040_v9 }
  0xbc   :  { %821 = vmatprep.mubr.bf16.mxu0 %v2041_v10  ;;  %949 = vmatprep.mubr.bf16.mxu1 %v2043_v11 }
  0xc3   :  { %822 = vmatmul.mubr.bf16.gmra.mrb[56].mxu0 %v2045_v12  ;;  %950 = vmatmul.mubr.bf16.gmra.mrb[56].mxu1 %v2046_v13  ;;  %v106_v12 = vld [vmem:[#allocation2 + $0x28] sm:$0xff] }
  0xc4   :  { %829 = vmatprep.mubr.bf16.mxu0 %v2047_v14  ;;  %957 = vmatprep.mubr.bf16.mxu1 %v2049_v15  ;;  %v138_v13 = vld [vmem:[#allocation2 + $0x128] sm:$0xff] }
  0xcb   :  { %830 = vmatmul.mubr.bf16.gmra.mrb[60].mxu0 %v2051_v16  ;;  %958 = vmatmul.mubr.bf16.gmra.mrb[60].mxu1 %v2052_v17 }
 0x126   :  { %v711_v20 = vpop.f32.mrb[0].mxu0  ;;  %v839_v21 = vpop.f32.mrb[0].mxu1 }
 0x127   :  { %v966_v24 = vadd.f32 %v711_v20, %v101_v18  ;;  %v998_v25 = vadd.f32 %v839_v21, %v133_v19  ;;  %v713_v26 = vpop.f32.mrb[1].mxu0  ;;  %v841_v27 = vpop.f32.mrb[1].mxu1 }
 0x128   :  { %v714_v28 = vpop.f32.mrb[2].mxu0  ;;  %v842_v29 = vpop.f32.mrb[2].mxu1 }
 0x129   :  { %1031 = vst.msk [vmem:[#allocation2] sm:$0xff] %vm36_vm0, %v966_v24  ;;  %1063 = vst.msk [vmem:[#allocation2 + $0x100] sm:$0xff] %vm36_vm0, %v998_v25  ;;  %v967_v30 = vadd.f32 %v714_v28, %v102_v22  ;;  %v999_v31 = vadd.f32 %v842_v29, %v134_v23  ;;  %v716_v32 = vpop.f32.mrb[3].mxu0  ;;  %v844_v33 = vpop.f32.mrb[3].mxu1 }
 0x12b   :  { %1032 = vst.msk [vmem:[#allocation2 + $0x8] sm:$0xff] %vm36_vm0, %v967_v30  ;;  %1064 = vst.msk [vmem:[#allocation2 + $0x108] sm:$0xff] %vm36_vm0, %v999_v31 }
 0x12e   :  { %v719_v37 = vpop.f32.mrb[4].mxu0  ;;  %v847_v38 = vpop.f32.mrb[4].mxu1 }
 0x12f   :  { %v968_v41 = vadd.f32 %v719_v37, %v103_v34  ;;  %v1000_v42 = vadd.f32 %v847_v38, %v135_v35  ;;  %v721_v43 = vpop.f32.mrb[5].mxu0  ;;  %v849_v44 = vpop.f32.mrb[5].mxu1 }
 0x130   :  { %v1098_v45 = vld [vmem:[#allocation2] sm:$0xff]  ;;  %v722_v48 = vpop.f32.mrb[6].mxu0  ;;  %v850_v49 = vpop.f32.mrb[6].mxu1  ;;  %v108_v43 = vld [vmem:[#allocation2 + $0x38] sm:$0xff] }
 0x131   :  { %v1130_v47 = vld [vmem:[#allocation2 + $0x100] sm:$0xff]  ;;  %v1169_v50 = vmul.f32 %v2340_v36, %v1098_v45  ;;  %1033 = vst.msk [vmem:[#allocation2 + $0x10] sm:$0xff] %vm36_vm0, %v968_v41  ;;  %1065 = vst.msk [vmem:[#allocation2 + $0x110] sm:$0xff] %vm36_vm0, %v1000_v42  ;;  %v969_v52 = vadd.f32 %v722_v48, %v104_v39  ;;  %v1001_v53 = vadd.f32 %v850_v49, %v136_v40  ;;  %v724_v54 = vpop.f32.mrb[7].mxu0  ;;  %v852_v55 = vpop.f32.mrb[7].mxu1  ;;  %v107_v39 = vld [vmem:[#allocation2 + $0x30] sm:$0xff] }
 0x132   :  { %v1201_v51 = vmul.f32 %v2340_v36, %v1130_v47  ;;  %v1099_v56 = vld [vmem:[#allocation2 + $0x8] sm:$0xff]  ;;  %v139_v40 = vld [vmem:[#allocation2 + $0x130] sm:$0xff]  ;;  %v140_v44 = vld [vmem:[#allocation2 + $0x138] sm:$0xff] }
 0x133   :  { %v1131_v57 = vld [vmem:[#allocation2 + $0x108] sm:$0xff]  ;;  %v1240_v58 = vadd.f32 %v2345_v46, %v1169_v50  ;;  %v1170_v60 = vmul.f32 %v2340_v36, %v1099_v56  ;;  %1034 = vst.msk [vmem:[#allocation2 + $0x18] sm:$0xff] %vm36_vm0, %v969_v52  ;;  %1066 = vst.msk [vmem:[#allocation2 + $0x118] sm:$0xff] %vm36_vm0, %v1001_v53 }
 0x134   :  { %v1272_v59 = vadd.f32 %v2345_v46, %v1201_v51  ;;  %v1202_v61 = vmul.f32 %v2340_v36, %v1131_v57 }
 0x135   :  { %v1304_v62 = vmax.f32 %v1240_v58, 0.0  ;;  %v1241_v0 = vadd.f32 %v2345_v46, %v1170_v60 }
 0x136   :  { %v1336_v63 = vmax.f32 %v1272_v59, 0.0  ;;  %v1273_v1 = vadd.f32 %v2345_v46, %v1202_v61  ;;  %v727_v4 = vpop.f32.mrb[8].mxu0  ;;  %v855_v5 = vpop.f32.mrb[8].mxu1 }
 0x137   :  { %v1840_v6 = vpack.c.bf16 %v1304_v62, %v1304_v62  ;;  %v1305_v8 = vmax.f32 %v1241_v0, 0.0  ;;  %v729_v10 = vpop.f32.mrb[9].mxu0  ;;  %v857_v11 = vpop.f32.mrb[9].mxu1  ;;  %v970_v16 = vadd.f32 %v727_v4, %v105_v2  ;;  %v1002_v17 = vadd.f32 %v855_v5, %v137_v3 }
 0x138   :  { %v1872_v7 = vpack.c.bf16 %v1336_v63, %v1336_v63  ;;  %v1337_v9 = vmax.f32 %v1273_v1, 0.0  ;;  %v1100_v14 = vld [vmem:[#allocation2 + $0x10] sm:$0xff]  ;;  %v730_v18 = vpop.f32.mrb[10].mxu0  ;;  %v858_v19 = vpop.f32.mrb[10].mxu1 }
 0x139   :  { %v1132_v15 = vld [vmem:[#allocation2 + $0x110] sm:$0xff]  ;;  %1625 = vst.msk [vmem:[%s2805_s4] sm:$0xf] %vm1624_vm1, %v1840_v6  ;;  %v1841_v20 = vpack.c.bf16 %v1305_v8, %v1305_v8  ;;  %v1171_v22 = vmul.f32 %v2340_v36, %v1100_v14  ;;  %v732_v24 = vpop.f32.mrb[11].mxu0  ;;  %v860_v25 = vpop.f32.mrb[11].mxu1  ;;  %v971_v28 = vadd.f32 %v730_v18, %v106_v12  ;;  %v1003_v29 = vadd.f32 %v858_v19, %v138_v13  ;;  %v109_v8 = vld [vmem:[#allocation2 + $0x40] sm:$0xff] }
 0x13a   :  { %1657 = vst.msk [vmem:[%s2805_s4 + $0x80] sm:$0xf] %vm1624_vm1, %v1872_v7  ;;  %v1873_v21 = vpack.c.bf16 %v1337_v9, %v1337_v9  ;;  %v1203_v23 = vmul.f32 %v2340_v36, %v1132_v15  ;;  %v1101_v26 = vld [vmem:[#allocation2 + $0x18] sm:$0xff]  ;;  %v141_v9 = vld [vmem:[#allocation2 + $0x140] sm:$0xff] }
 0x13b   :  { %v1133_v27 = vld [vmem:[#allocation2 + $0x118] sm:$0xff]  ;;  %1035 = vst.msk [vmem:[#allocation2 + $0x20] sm:$0xff] %vm36_vm0, %v970_v16  ;;  %1067 = vst.msk [vmem:[#allocation2 + $0x120] sm:$0xff] %vm36_vm0, %v1002_v17  ;;  %v1242_v30 = vadd.f32 %v2345_v46, %v1171_v22  ;;  %v1172_v32 = vmul.f32 %v2340_v36, %v1101_v26  ;;  %v110_v16 = vld [vmem:[#allocation2 + $0x48] sm:$0xff] }
 0x13c   :  { %1626 = vst.msk [vmem:[%s2805_s4 + $0x4] sm:$0xf] %vm1624_vm1, %v1841_v20  ;;  %1658 = vst.msk [vmem:[%s2805_s4 + $0x84] sm:$0xf] %vm1624_vm1, %v1873_v21  ;;  %v1274_v31 = vadd.f32 %v2345_v46, %v1203_v23  ;;  %v1204_v33 = vmul.f32 %v2340_v36, %v1133_v27  ;;  %v142_v17 = vld [vmem:[#allocation2 + $0x148] sm:$0xff] }
 0x13d   :  { %1036 = vst.msk [vmem:[#allocation2 + $0x28] sm:$0xff] %vm36_vm0, %v971_v28  ;;  %1068 = vst.msk [vmem:[#allocation2 + $0x128] sm:$0xff] %vm36_vm0, %v1003_v29  ;;  %v1306_v34 = vmax.f32 %v1242_v30, 0.0  ;;  %v1243_v37 = vadd.f32 %v2345_v46, %v1172_v32 }
 0x13e   :  { %v1338_v35 = vmax.f32 %v1274_v31, 0.0  ;;  %v1275_v38 = vadd.f32 %v2345_v46, %v1204_v33  ;;  %v735_v41 = vpop.f32.mrb[12].mxu0  ;;  %v863_v42 = vpop.f32.mrb[12].mxu1 }
 0x13f   :  { %v1842_v45 = vpack.c.bf16 %v1306_v34, %v1306_v34  ;;  %v1307_v48 = vmax.f32 %v1243_v37, 0.0  ;;  %v737_v50 = vpop.f32.mrb[13].mxu0  ;;  %v865_v51 = vpop.f32.mrb[13].mxu1  ;;  %v972_v52 = vadd.f32 %v735_v41, %v107_v39  ;;  %v1004_v53 = vadd.f32 %v863_v42, %v139_v40 }
 0x140   :  { %v1874_v47 = vpack.c.bf16 %v1338_v35, %v1338_v35  ;;  %v1339_v49 = vmax.f32 %v1275_v38, 0.0  ;;  %v738_v54 = vpop.f32.mrb[14].mxu0  ;;  %v866_v55 = vpop.f32.mrb[14].mxu1 }
 0x141   :  { %1627 = vst.msk [vmem:[%s2805_s4 + $0x8] sm:$0xf] %vm1624_vm1, %v1842_v45  ;;  %v1843_v56 = vpack.c.bf16 %v1307_v48, %v1307_v48  ;;  %v973_v60 = vadd.f32 %v738_v54, %v108_v43  ;;  %v1005_v61 = vadd.f32 %v866_v55, %v140_v44  ;;  %v740_v62 = vpop.f32.mrb[15].mxu0  ;;  %v868_v63 = vpop.f32.mrb[15].mxu1  ;;  %v111_v45 = vld [vmem:[#allocation2 + $0x50] sm:$0xff] }
 0x142   :  { %1659 = vst.msk [vmem:[%s2805_s4 + $0x88] sm:$0xf] %vm1624_vm1, %v1874_v47  ;;  %v1875_v57 = vpack.c.bf16 %v1339_v49, %v1339_v49  ;;  %v1102_v58 = vld [vmem:[#allocation2 + $0x20] sm:$0xff]  ;;  %v143_v47 = vld [vmem:[#allocation2 + $0x150] sm:$0xff] }
 0x143   :  { %v1134_v59 = vld [vmem:[#allocation2 + $0x120] sm:$0xff]  ;;  %v1173_v0 = vmul.f32 %v2340_v36, %v1102_v58  ;;  %1037 = vst.msk [vmem:[#allocation2 + $0x30] sm:$0xff] %vm36_vm0, %v972_v52  ;;  %1069 = vst.msk [vmem:[#allocation2 + $0x130] sm:$0xff] %vm36_vm0, %v1004_v53 }
 0x144   :  { %v1205_v1 = vmul.f32 %v2340_v36, %v1134_v59  ;;  %1628 = vst.msk [vmem:[%s2805_s4 + $0xc] sm:$0xf] %vm1624_vm1, %v1843_v56  ;;  %1660 = vst.msk [vmem:[%s2805_s4 + $0x8c] sm:$0xf] %vm1624_vm1, %v1875_v57  ;;  %v1103_v2 = vld [vmem:[#allocation2 + $0x28] sm:$0xff] }
 0x145   :  { %v1135_v3 = vld [vmem:[#allocation2 + $0x128] sm:$0xff]  ;;  %1038 = vst.msk [vmem:[#allocation2 + $0x38] sm:$0xff] %vm36_vm0, %v973_v60  ;;  %1070 = vst.msk [vmem:[#allocation2 + $0x138] sm:$0xff] %vm36_vm0, %v1005_v61  ;;  %v1244_v4 = vadd.f32 %v2345_v46, %v1173_v0  ;;  %v1174_v6 = vmul.f32 %v2340_v36, %v1103_v2  ;;  %v112_v60 = vld [vmem:[#allocation2 + $0x58] sm:$0xff] }
 0x146   :  { %v1276_v5 = vadd.f32 %v2345_v46, %v1205_v1  ;;  %v1206_v7 = vmul.f32 %v2340_v36, %v1135_v3  ;;  %v743_v14 = vpop.f32.mrb[16].mxu0  ;;  %v871_v15 = vpop.f32.mrb[16].mxu1  ;;  %v144_v61 = vld [vmem:[#allocation2 + $0x158] sm:$0xff] }
 0x147   :  { %v1308_v10 = vmax.f32 %v1244_v4, 0.0  ;;  %v1245_v12 = vadd.f32 %v2345_v46, %v1174_v6  ;;  %v974_v18 = vadd.f32 %v743_v14, %v109_v8  ;;  %v1006_v19 = vadd.f32 %v871_v15, %v141_v9  ;;  %v745_v20 = vpop.f32.mrb[17].mxu0  ;;  %v873_v21 = vpop.f32.mrb[17].mxu1 }
 0x148   :  { %v1340_v11 = vmax.f32 %v1276_v5, 0.0  ;;  %v1277_v13 = vadd.f32 %v2345_v46, %v1206_v7  ;;  %v746_v26 = vpop.f32.mrb[18].mxu0  ;;  %v874_v27 = vpop.f32.mrb[18].mxu1 }
 0x149   :  { %v1844_v22 = vpack.c.bf16 %v1308_v10, %v1308_v10  ;;  %v1309_v24 = vmax.f32 %v1245_v12, 0.0  ;;  %1039 = vst.msk [vmem:[#allocation2 + $0x40] sm:$0xff] %vm36_vm0, %v974_v18  ;;  %1071 = vst.msk [vmem:[#allocation2 + $0x140] sm:$0xff] %vm36_vm0, %v1006_v19  ;;  %v975_v30 = vadd.f32 %v746_v26, %v110_v16  ;;  %v1007_v31 = vadd.f32 %v874_v27, %v142_v17  ;;  %v748_v32 = vpop.f32.mrb[19].mxu0  ;;  %v876_v33 = vpop.f32.mrb[19].mxu1 }
 0x14a   :  { %v1876_v23 = vpack.c.bf16 %v1340_v11, %v1340_v11  ;;  %v1341_v25 = vmax.f32 %v1277_v13, 0.0  ;;  %v1104_v28 = vld [vmem:[#allocation2 + $0x30] sm:$0xff]  ;;  %v114_v32 = vld [vmem:[#allocation2 + $0x68] sm:$0xff] }
 0x14b   :  { %v1136_v29 = vld [vmem:[#allocation2 + $0x130] sm:$0xff]  ;;  %1629 = vst.msk [vmem:[%s2805_s4 + $0x10] sm:$0xf] %vm1624_vm1, %v1844_v22  ;;  %v1845_v34 = vpack.c.bf16 %v1309_v24, %v1309_v24  ;;  %v1175_v37 = vmul.f32 %v2340_v36, %v1104_v28  ;;  %v113_v22 = vld [vmem:[#allocation2 + $0x60] sm:$0xff]  ;;  %v146_v33 = vld [vmem:[#allocation2 + $0x168] sm:$0xff] }
 0x14c   :  { %1661 = vst.msk [vmem:[%s2805_s4 + $0x90] sm:$0xf] %vm1624_vm1, %v1876_v23  ;;  %v1877_v35 = vpack.c.bf16 %v1341_v25, %v1341_v25  ;;  %v1207_v38 = vmul.f32 %v2340_v36, %v1136_v29  ;;  %v1105_v39 = vld [vmem:[#allocation2 + $0x38] sm:$0xff]  ;;  %v145_v23 = vld [vmem:[#allocation2 + $0x160] sm:$0xff] }
 0x14d   :  { %v1137_v40 = vld [vmem:[#allocation2 + $0x138] sm:$0xff]  ;;  %v1176_v41 = vmul.f32 %v2340_v36, %v1105_v39  ;;  %1040 = vst.msk [vmem:[#allocation2 + $0x48] sm:$0xff] %vm36_vm0, %v975_v30  ;;  %1072 = vst.msk [vmem:[#allocation2 + $0x148] sm:$0xff] %vm36_vm0, %v1007_v31  ;;  %v1246_v43 = vadd.f32 %v2345_v46, %v1175_v37 }
 0x14e   :  { %v1208_v42 = vmul.f32 %v2340_v36, %v1137_v40  ;;  %1630 = vst.msk [vmem:[%s2805_s4 + $0x14] sm:$0xf] %vm1624_vm1, %v1845_v34  ;;  %1662 = vst.msk [vmem:[%s2805_s4 + $0x94] sm:$0xf] %vm1624_vm1, %v1877_v35  ;;  %v1278_v44 = vadd.f32 %v2345_v46, %v1207_v38  ;;  %v751_v52 = vpop.f32.mrb[20].mxu0  ;;  %v879_v53 = vpop.f32.mrb[20].mxu1 }
 0x14f   :  { %v1247_v48 = vadd.f32 %v2345_v46, %v1176_v41  ;;  %v1310_v50 = vmax.f32 %v1246_v43, 0.0  ;;  %v976_v56 = vadd.f32 %v751_v52, %v111_v45  ;;  %v1008_v57 = vadd.f32 %v879_v53, %v143_v47  ;;  %v753_v58 = vpop.f32.mrb[21].mxu0  ;;  %v881_v59 = vpop.f32.mrb[21].mxu1 }
 0x150   :  { %v1279_v49 = vadd.f32 %v2345_v46, %v1208_v42  ;;  %v1342_v51 = vmax.f32 %v1278_v44, 0.0  ;;  %v1106_v0 = vld [vmem:[#allocation2 + $0x40] sm:$0xff]  ;;  %v754_v2 = vpop.f32.mrb[22].mxu0  ;;  %v882_v3 = vpop.f32.mrb[22].mxu1 }
 0x151   :  { %v1311_v54 = vmax.f32 %v1247_v48, 0.0  ;;  %v1846_v62 = vpack.c.bf16 %v1310_v50, %v1310_v50  ;;  %v1138_v1 = vld [vmem:[#allocation2 + $0x140] sm:$0xff]  ;;  %v1177_v6 = vmul.f32 %v2340_v36, %v1106_v0  ;;  %1041 = vst.msk [vmem:[#allocation2 + $0x50] sm:$0xff] %vm36_vm0, %v976_v56  ;;  %1073 = vst.msk [vmem:[#allocation2 + $0x150] sm:$0xff] %vm36_vm0, %v1008_v57  ;;  %v756_v8 = vpop.f32.mrb[23].mxu0  ;;  %v884_v9 = vpop.f32.mrb[23].mxu1  ;;  %v977_v12 = vadd.f32 %v754_v2, %v112_v60 }
 0x152   :  { %v1343_v55 = vmax.f32 %v1279_v49, 0.0  ;;  %v1878_v63 = vpack.c.bf16 %v1342_v51, %v1342_v51  ;;  %v1209_v7 = vmul.f32 %v2340_v36, %v1138_v1  ;;  %v1009_v13 = vadd.f32 %v882_v3, %v144_v61  ;;  %v115_v56 = vld [vmem:[#allocation2 + $0x70] sm:$0xff]  ;;  %v116_v0 = vld [vmem:[#allocation2 + $0x78] sm:$0xff] }
 0x153   :  { %v1847_v4 = vpack.c.bf16 %v1311_v54, %v1311_v54  ;;  %1631 = vst.msk [vmem:[%s2805_s4 + $0x18] sm:$0xf] %vm1624_vm1, %v1846_v62  ;;  %v1248_v14 = vadd.f32 %v2345_v46, %v1177_v6  ;;  %v147_v57 = vld [vmem:[#allocation2 + $0x170] sm:$0xff]  ;;  %v148_v1 = vld [vmem:[#allocation2 + $0x178] sm:$0xff] }
 0x154   :  { %v1879_v5 = vpack.c.bf16 %v1343_v55, %v1343_v55  ;;  %1663 = vst.msk [vmem:[%s2805_s4 + $0x98] sm:$0xf] %vm1624_vm1, %v1878_v63  ;;  %v1107_v10 = vld [vmem:[#allocation2 + $0x48] sm:$0xff]  ;;  %v1280_v15 = vadd.f32 %v2345_v46, %v1209_v7 }
 0x155   :  { %v1139_v11 = vld [vmem:[#allocation2 + $0x148] sm:$0xff]  ;;  %1632 = vst.msk [vmem:[%s2805_s4 + $0x1c] sm:$0xf] %vm1624_vm1, %v1847_v4  ;;  %v1178_v16 = vmul.f32 %v2340_v36, %v1107_v10  ;;  %v1312_v18 = vmax.f32 %v1248_v14, 0.0 }
 0x156   :  { %1664 = vst.msk [vmem:[%s2805_s4 + $0x9c] sm:$0xf] %vm1624_vm1, %v1879_v5  ;;  %v1210_v17 = vmul.f32 %v2340_v36, %v1139_v11  ;;  %v1344_v19 = vmax.f32 %v1280_v15, 0.0  ;;  %v759_v24 = vpop.f32.mrb[24].mxu0  ;;  %v887_v25 = vpop.f32.mrb[24].mxu1 }
 0x157   :  { %1042 = vst.msk [vmem:[#allocation2 + $0x58] sm:$0xff] %vm36_vm0, %v977_v12  ;;  %1074 = vst.msk [vmem:[#allocation2 + $0x158] sm:$0xff] %vm36_vm0, %v1009_v13  ;;  %v1249_v20 = vadd.f32 %v2345_v46, %v1178_v16  ;;  %v1848_v26 = vpack.c.bf16 %v1312_v18, %v1312_v18  ;;  %v761_v30 = vpop.f32.mrb[25].mxu0  ;;  %v889_v31 = vpop.f32.mrb[25].mxu1  ;;  %v978_v37 = vadd.f32 %v759_v24, %v113_v22 }
 0x158   :  { %v1281_v21 = vadd.f32 %v2345_v46, %v1210_v17  ;;  %v1880_v27 = vpack.c.bf16 %v1344_v19, %v1344_v19  ;;  %v1108_v34 = vld [vmem:[#allocation2 + $0x50] sm:$0xff]  ;;  %v1010_v38 = vadd.f32 %v887_v25, %v145_v23  ;;  %v762_v39 = vpop.f32.mrb[26].mxu0  ;;  %v890_v40 = vpop.f32.mrb[26].mxu1 }
 0x159   :  { %v1313_v28 = vmax.f32 %v1249_v20, 0.0  ;;  %v1140_v35 = vld [vmem:[#allocation2 + $0x150] sm:$0xff]  ;;  %1633 = vst.msk [vmem:[%s2805_s4 + $0x20] sm:$0xf] %vm1624_vm1, %v1848_v26  ;;  %v1179_v43 = vmul.f32 %v2340_v36, %v1108_v34  ;;  %v764_v45 = vpop.f32.mrb[27].mxu0  ;;  %v892_v47 = vpop.f32.mrb[27].mxu1  ;;  %v979_v48 = vadd.f32 %v762_v39, %v114_v32  ;;  %v1011_v49 = vadd.f32 %v890_v40, %v146_v33 }
 0x15a   :  { %v1345_v29 = vmax.f32 %v1281_v21, 0.0  ;;  %1665 = vst.msk [vmem:[%s2805_s4 + $0xa0] sm:$0xf] %vm1624_vm1, %v1880_v27  ;;  %v1211_v44 = vmul.f32 %v2340_v36, %v1140_v35 }
 0x15b   :  { %v1849_v41 = vpack.c.bf16 %v1313_v28, %v1313_v28  ;;  %1043 = vst.msk [vmem:[#allocation2 + $0x60] sm:$0xff] %vm36_vm0, %v978_v37  ;;  %1075 = vst.msk [vmem:[#allocation2 + $0x160] sm:$0xff] %vm36_vm0, %v1010_v38  ;;  %v1250_v50 = vadd.f32 %v2345_v46, %v1179_v43  ;;  %v117_v28 = vld [vmem:[#allocation2 + $0x80] sm:$0xff]  ;;  %v118_v37 = vld [vmem:[#allocation2 + $0x88] sm:$0xff] }
 0x15c   :  { %v1881_v42 = vpack.c.bf16 %v1345_v29, %v1345_v29  ;;  %v1282_v51 = vadd.f32 %v2345_v46, %v1211_v44  ;;  %1044 = vst.msk [vmem:[#allocation2 + $0x68] sm:$0xff] %vm36_vm0, %v979_v48  ;;  %1076 = vst.msk [vmem:[#allocation2 + $0x168] sm:$0xff] %vm36_vm0, %v1011_v49  ;;  %v149_v29 = vld [vmem:[#allocation2 + $0x180] sm:$0xff]  ;;  %v150_v38 = vld [vmem:[#allocation2 + $0x188] sm:$0xff] }
 0x15d   :  { %1634 = vst.msk [vmem:[%s2805_s4 + $0x24] sm:$0xf] %vm1624_vm1, %v1849_v41  ;;  %v1314_v58 = vmax.f32 %v1250_v50, 0.0 }
 0x15e   :  { %1666 = vst.msk [vmem:[%s2805_s4 + $0xa4] sm:$0xf] %vm1624_vm1, %v1881_v42  ;;  %v1109_v52 = vld [vmem:[#allocation2 + $0x58] sm:$0xff]  ;;  %v1346_v59 = vmax.f32 %v1282_v51, 0.0  ;;  %v767_v62 = vpop.f32.mrb[28].mxu0  ;;  %v895_v63 = vpop.f32.mrb[28].mxu1 }
 0x15f   :  { %v1141_v53 = vld [vmem:[#allocation2 + $0x158] sm:$0xff]  ;;  %v1180_v54 = vmul.f32 %v2340_v36, %v1109_v52  ;;  %v1850_v2 = vpack.c.bf16 %v1314_v58, %v1314_v58  ;;  %v980_v4 = vadd.f32 %v767_v62, %v115_v56  ;;  %v1012_v5 = vadd.f32 %v895_v63, %v147_v57  ;;  %v769_v6 = vpop.f32.mrb[29].mxu0  ;;  %v897_v7 = vpop.f32.mrb[29].mxu1 }
 0x160   :  { %v1212_v55 = vmul.f32 %v2340_v36, %v1141_v53  ;;  %v1882_v3 = vpack.c.bf16 %v1346_v59, %v1346_v59  ;;  %v770_v10 = vpop.f32.mrb[30].mxu0  ;;  %v898_v11 = vpop.f32.mrb[30].mxu1  ;;  %v119_v6 = vld [vmem:[#allocation2 + $0x90] sm:$0xff] }
 0x161   :  { %v1251_v60 = vadd.f32 %v2345_v46, %v1180_v54  ;;  %1635 = vst.msk [vmem:[%s2805_s4 + $0x28] sm:$0xf] %vm1624_vm1, %v1850_v2  ;;  %v981_v14 = vadd.f32 %v770_v10, %v116_v0  ;;  %v1013_v15 = vadd.f32 %v898_v11, %v148_v1  ;;  %v772_v16 = vpop.f32.mrb[31].mxu0  ;;  %v900_v17 = vpop.f32.mrb[31].mxu1  ;;  %v151_v7 = vld [vmem:[#allocation2 + $0x190] sm:$0xff] }
 0x162   :  { %v1283_v61 = vadd.f32 %v2345_v46, %v1212_v55  ;;  %1667 = vst.msk [vmem:[%s2805_s4 + $0xa8] sm:$0xf] %vm1624_vm1, %v1882_v3  ;;  %v1110_v12 = vld [vmem:[#allocation2 + $0x60] sm:$0xff]  ;;  %v120_v16 = vld [vmem:[#allocation2 + $0x98] sm:$0xff] }
 0x163   :  { %v1315_v8 = vmax.f32 %v1251_v60, 0.0  ;;  %v1142_v13 = vld [vmem:[#allocation2 + $0x160] sm:$0xff]  ;;  %1045 = vst.msk [vmem:[#allocation2 + $0x70] sm:$0xff] %vm36_vm0, %v980_v4  ;;  %1077 = vst.msk [vmem:[#allocation2 + $0x170] sm:$0xff] %vm36_vm0, %v1012_v5  ;;  %v1181_v20 = vmul.f32 %v2340_v36, %v1110_v12  ;;  %v1111_v22 = vld [vmem:[#allocation2 + $0x68] sm:$0xff] }
 0x164   :  { %v1347_v9 = vmax.f32 %v1283_v61, 0.0  ;;  %v1213_v21 = vmul.f32 %v2340_v36, %v1142_v13  ;;  %v1143_v23 = vld [vmem:[#allocation2 + $0x168] sm:$0xff]  ;;  %1046 = vst.msk [vmem:[#allocation2 + $0x78] sm:$0xff] %vm36_vm0, %v981_v14  ;;  %1078 = vst.msk [vmem:[#allocation2 + $0x178] sm:$0xff] %vm36_vm0, %v1013_v15  ;;  %v1182_v26 = vmul.f32 %v2340_v36, %v1111_v22  ;;  %v152_v17 = vld [vmem:[#allocation2 + $0x198] sm:$0xff] }
 0x165   :  { %v1851_v18 = vpack.c.bf16 %v1315_v8, %v1315_v8  ;;  %v1252_v24 = vadd.f32 %v2345_v46, %v1181_v20  ;;  %v1214_v27 = vmul.f32 %v2340_v36, %v1143_v23 }
 0x166   :  { %v1883_v19 = vpack.c.bf16 %v1347_v9, %v1347_v9  ;;  %v1284_v25 = vadd.f32 %v2345_v46, %v1213_v21  ;;  %v1253_v32 = vadd.f32 %v2345_v46, %v1182_v26  ;;  %v775_v34 = vpop.f32.mrb[32].mxu0  ;;  %v903_v35 = vpop.f32.mrb[32].mxu1 }
 0x167   :  { %1636 = vst.msk [vmem:[%s2805_s4 + $0x2c] sm:$0xf] %vm1624_vm1, %v1851_v18  ;;  %v1316_v30 = vmax.f32 %v1252_v24, 0.0  ;;  %v1285_v33 = vadd.f32 %v2345_v46, %v1214_v27  ;;  %v982_v39 = vadd.f32 %v775_v34, %v117_v28  ;;  %v1014_v40 = vadd.f32 %v903_v35, %v149_v29  ;;  %v777_v41 = vpop.f32.mrb[33].mxu0  ;;  %v905_v42 = vpop.f32.mrb[33].mxu1 }
 0x168   :  { %1668 = vst.msk [vmem:[%s2805_s4 + $0xac] sm:$0xf] %vm1624_vm1, %v1883_v19  ;;  %v1348_v31 = vmax.f32 %v1284_v25, 0.0  ;;  %v1317_v45 = vmax.f32 %v1253_v32, 0.0  ;;  %v778_v50 = vpop.f32.mrb[34].mxu0  ;;  %v906_v51 = vpop.f32.mrb[34].mxu1 }
 0x169   :  { %v1852_v43 = vpack.c.bf16 %v1316_v30, %v1316_v30  ;;  %v1349_v47 = vmax.f32 %v1285_v33, 0.0  ;;  %1047 = vst.msk [vmem:[#allocation2 + $0x80] sm:$0xff] %vm36_vm0, %v982_v39  ;;  %1079 = vst.msk [vmem:[#allocation2 + $0x180] sm:$0xff] %vm36_vm0, %v1014_v40  ;;  %v983_v54 = vadd.f32 %v778_v50, %v118_v37  ;;  %v1015_v55 = vadd.f32 %v906_v51, %v150_v38  ;;  %v780_v56 = vpop.f32.mrb[35].mxu0  ;;  %v908_v57 = vpop.f32.mrb[35].mxu1 }
 0x16a   :  { %v1884_v44 = vpack.c.bf16 %v1348_v31, %v1348_v31  ;;  %v1112_v48 = vld [vmem:[#allocation2 + $0x70] sm:$0xff]  ;;  %v1853_v58 = vpack.c.bf16 %v1317_v45, %v1317_v45 }
 0x16b   :  { %v1144_v49 = vld [vmem:[#allocation2 + $0x170] sm:$0xff]  ;;  %v1183_v52 = vmul.f32 %v2340_v36, %v1112_v48  ;;  %1637 = vst.msk [vmem:[%s2805_s4 + $0x30] sm:$0xf] %vm1624_vm1, %v1852_v43  ;;  %v1885_v59 = vpack.c.bf16 %v1349_v47, %v1349_v47  ;;  %v1113_v60 = vld [vmem:[#allocation2 + $0x78] sm:$0xff]  ;;  %v121_v43 = vld [vmem:[#allocation2 + $0xa0] sm:$0xff] }
 0x16c   :  { %v1215_v53 = vmul.f32 %v2340_v36, %v1144_v49  ;;  %1669 = vst.msk [vmem:[%s2805_s4 + $0xb0] sm:$0xf] %vm1624_vm1, %v1884_v44  ;;  %v1145_v61 = vld [vmem:[#allocation2 + $0x178] sm:$0xff]  ;;  %v1184_v0 = vmul.f32 %v2340_v36, %v1113_v60  ;;  %1638 = vst.msk [vmem:[%s2805_s4 + $0x34] sm:$0xf] %vm1624_vm1, %v1853_v58  ;;  %v153_v44 = vld [vmem:[#allocation2 + $0x1a0] sm:$0xff] }
 0x16d   :  { %v1254_v62 = vadd.f32 %v2345_v46, %v1183_v52  ;;  %v1216_v1 = vmul.f32 %v2340_v36, %v1145_v61  ;;  %1048 = vst.msk [vmem:[#allocation2 + $0x88] sm:$0xff] %vm36_vm0, %v983_v54  ;;  %1080 = vst.msk [vmem:[#allocation2 + $0x188] sm:$0xff] %vm36_vm0, %v1015_v55  ;;  %v122_v48 = vld [vmem:[#allocation2 + $0xa8] sm:$0xff] }
 0x16e   :  { %v1286_v63 = vadd.f32 %v2345_v46, %v1215_v53  ;;  %1670 = vst.msk [vmem:[%s2805_s4 + $0xb4] sm:$0xf] %vm1624_vm1, %v1885_v59  ;;  %v1255_v4 = vadd.f32 %v2345_v46, %v1184_v0  ;;  %v783_v8 = vpop.f32.mrb[36].mxu0  ;;  %v911_v9 = vpop.f32.mrb[36].mxu1  ;;  %v154_v49 = vld [vmem:[#allocation2 + $0x1a8] sm:$0xff] }
 0x16f   :  { %v1318_v2 = vmax.f32 %v1254_v62, 0.0  ;;  %v1287_v5 = vadd.f32 %v2345_v46, %v1216_v1  ;;  %v785_v14 = vpop.f32.mrb[37].mxu0  ;;  %v913_v15 = vpop.f32.mrb[37].mxu1  ;;  %v984_v20 = vadd.f32 %v783_v8, %v119_v6  ;;  %v1016_v21 = vadd.f32 %v911_v9, %v151_v7 }
 0x170   :  { %v1350_v3 = vmax.f32 %v1286_v63, 0.0  ;;  %v1319_v12 = vmax.f32 %v1255_v4, 0.0  ;;  %v1114_v18 = vld [vmem:[#allocation2 + $0x80] sm:$0xff]  ;;  %v786_v22 = vpop.f32.mrb[38].mxu0  ;;  %v914_v23 = vpop.f32.mrb[38].mxu1 }
 0x171   :  { %v1854_v10 = vpack.c.bf16 %v1318_v2, %v1318_v2  ;;  %v1351_v13 = vmax.f32 %v1287_v5, 0.0  ;;  %v1146_v19 = vld [vmem:[#allocation2 + $0x180] sm:$0xff]  ;;  %v1185_v26 = vmul.f32 %v2340_v36, %v1114_v18  ;;  %v788_v28 = vpop.f32.mrb[39].mxu0  ;;  %v916_v29 = vpop.f32.mrb[39].mxu1  ;;  %1049 = vst.msk [vmem:[#allocation2 + $0x90] sm:$0xff] %vm36_vm0, %v984_v20  ;;  %1081 = vst.msk [vmem:[#allocation2 + $0x190] sm:$0xff] %vm36_vm0, %v1016_v21  ;;  %v985_v32 = vadd.f32 %v786_v22, %v120_v16 }
 0x172   :  { %v1886_v11 = vpack.c.bf16 %v1350_v3, %v1350_v3  ;;  %v1855_v24 = vpack.c.bf16 %v1319_v12, %v1319_v12  ;;  %v1217_v27 = vmul.f32 %v2340_v36, %v1146_v19  ;;  %v1017_v33 = vadd.f32 %v914_v23, %v152_v17  ;;  %v123_v12 = vld [vmem:[#allocation2 + $0xb0] sm:$0xff]  ;;  %v124_v20 = vld [vmem:[#allocation2 + $0xb8] sm:$0xff] }
 0x173   :  { %1639 = vst.msk [vmem:[%s2805_s4 + $0x38] sm:$0xf] %vm1624_vm1, %v1854_v10  ;;  %v1887_v25 = vpack.c.bf16 %v1351_v13, %v1351_v13  ;;  %v1256_v34 = vadd.f32 %v2345_v46, %v1185_v26  ;;  %v155_v13 = vld [vmem:[#allocation2 + $0x1b0] sm:$0xff]  ;;  %v156_v21 = vld [vmem:[#allocation2 + $0x1b8] sm:$0xff] }
 0x174   :  { %1671 = vst.msk [vmem:[%s2805_s4 + $0xb8] sm:$0xf] %vm1624_vm1, %v1886_v11  ;;  %v1115_v30 = vld [vmem:[#allocation2 + $0x88] sm:$0xff]  ;;  %1640 = vst.msk [vmem:[%s2805_s4 + $0x3c] sm:$0xf] %vm1624_vm1, %v1855_v24  ;;  %v1288_v35 = vadd.f32 %v2345_v46, %v1217_v27 }
 0x175   :  { %v1147_v31 = vld [vmem:[#allocation2 + $0x188] sm:$0xff]  ;;  %1672 = vst.msk [vmem:[%s2805_s4 + $0xbc] sm:$0xf] %vm1624_vm1, %v1887_v25  ;;  %v1186_v37 = vmul.f32 %v2340_v36, %v1115_v30  ;;  %v1320_v39 = vmax.f32 %v1256_v34, 0.0 }
 0x176   :  { %v1218_v38 = vmul.f32 %v2340_v36, %v1147_v31  ;;  %1050 = vst.msk [vmem:[#allocation2 + $0x98] sm:$0xff] %vm36_vm0, %v985_v32  ;;  %1082 = vst.msk [vmem:[#allocation2 + $0x198] sm:$0xff] %vm36_vm0, %v1017_v33  ;;  %v1352_v40 = vmax.f32 %v1288_v35, 0.0  ;;  %v791_v45 = vpop.f32.mrb[40].mxu0  ;;  %v919_v47 = vpop.f32.mrb[40].mxu1 }
 0x177   :  { %v1257_v41 = vadd.f32 %v2345_v46, %v1186_v37  ;;  %v1856_v50 = vpack.c.bf16 %v1320_v39, %v1320_v39  ;;  %v793_v54 = vpop.f32.mrb[41].mxu0  ;;  %v921_v55 = vpop.f32.mrb[41].mxu1  ;;  %v986_v56 = vadd.f32 %v791_v45, %v121_v43  ;;  %v1018_v57 = vadd.f32 %v919_v47, %v153_v44 }
 0x178   :  { %v1289_v42 = vadd.f32 %v2345_v46, %v1218_v38  ;;  %v1888_v51 = vpack.c.bf16 %v1352_v40, %v1352_v40  ;;  %v794_v58 = vpop.f32.mrb[42].mxu0  ;;  %v922_v59 = vpop.f32.mrb[42].mxu1  ;;  %v1116_v62 = vld [vmem:[#allocation2 + $0x90] sm:$0xff] }
 0x179   :  { %v1321_v52 = vmax.f32 %v1257_v41, 0.0  ;;  %1641 = vst.msk [vmem:[%s2805_s4 + $0x40] sm:$0xf] %vm1624_vm1, %v1856_v50  ;;  %v1148_v63 = vld [vmem:[#allocation2 + $0x190] sm:$0xff]  ;;  %v987_v0 = vadd.f32 %v794_v58, %v122_v48  ;;  %v1019_v1 = vadd.f32 %v922_v59, %v154_v49  ;;  %v796_v2 = vpop.f32.mrb[43].mxu0  ;;  %v924_v3 = vpop.f32.mrb[43].mxu1  ;;  %v1187_v4 = vmul.f32 %v2340_v36, %v1116_v62 }
 0x17a   :  { %v1353_v53 = vmax.f32 %v1289_v42, 0.0  ;;  %1673 = vst.msk [vmem:[%s2805_s4 + $0xc0] sm:$0xf] %vm1624_vm1, %v1888_v51  ;;  %v1219_v5 = vmul.f32 %v2340_v36, %v1148_v63  ;;  %v125_v50 = vld [vmem:[#allocation2 + $0xc0] sm:$0xff] }
 0x17b   :  { %v1857_v60 = vpack.c.bf16 %v1321_v52, %v1321_v52  ;;  %1051 = vst.msk [vmem:[#allocation2 + $0xa0] sm:$0xff] %vm36_vm0, %v986_v56  ;;  %1083 = vst.msk [vmem:[#allocation2 + $0x1a0] sm:$0xff] %vm36_vm0, %v1018_v57  ;;  %v1258_v8 = vadd.f32 %v2345_v46, %v1187_v4  ;;  %v157_v51 = vld [vmem:[#allocation2 + $0x1c0] sm:$0xff] }
 0x17c   :  { %v1889_v61 = vpack.c.bf16 %v1353_v53, %v1353_v53  ;;  %1052 = vst.msk [vmem:[#allocation2 + $0xa8] sm:$0xff] %vm36_vm0, %v987_v0  ;;  %1084 = vst.msk [vmem:[#allocation2 + $0x1a8] sm:$0xff] %vm36_vm0, %v1019_v1  ;;  %v1290_v9 = vadd.f32 %v2345_v46, %v1219_v5  ;;  %v126_v0 = vld [vmem:[#allocation2 + $0xc8] sm:$0xff] }
 0x17d   :  { %1642 = vst.msk [vmem:[%s2805_s4 + $0x44] sm:$0xf] %vm1624_vm1, %v1857_v60  ;;  %v1117_v6 = vld [vmem:[#allocation2 + $0x98] sm:$0xff]  ;;  %v1322_v14 = vmax.f32 %v1258_v8, 0.0  ;;  %v158_v1 = vld [vmem:[#allocation2 + $0x1c8] sm:$0xff] }
 0x17e   :  { %1674 = vst.msk [vmem:[%s2805_s4 + $0xc4] sm:$0xf] %vm1624_vm1, %v1889_v61  ;;  %v1149_v7 = vld [vmem:[#allocation2 + $0x198] sm:$0xff]  ;;  %v1188_v10 = vmul.f32 %v2340_v36, %v1117_v6  ;;  %v1354_v15 = vmax.f32 %v1290_v9, 0.0  ;;  %v799_v18 = vpop.f32.mrb[44].mxu0  ;;  %v927_v19 = vpop.f32.mrb[44].mxu1 }
 0x17f   :  { %v1220_v11 = vmul.f32 %v2340_v36, %v1149_v7  ;;  %v988_v22 = vadd.f32 %v799_v18, %v123_v12  ;;  %v1020_v23 = vadd.f32 %v927_v19, %v155_v13  ;;  %v801_v24 = vpop.f32.mrb[45].mxu0  ;;  %v929_v25 = vpop.f32.mrb[45].mxu1  ;;  %v1858_v26 = vpack.c.bf16 %v1322_v14, %v1322_v14 }
 0x180   :  { %v1259_v16 = vadd.f32 %v2345_v46, %v1188_v10  ;;  %v1890_v27 = vpack.c.bf16 %v1354_v15, %v1354_v15  ;;  %v802_v30 = vpop.f32.mrb[46].mxu0  ;;  %v930_v31 = vpop.f32.mrb[46].mxu1 }
 0x181   :  { %v1291_v17 = vadd.f32 %v2345_v46, %v1220_v11  ;;  %1053 = vst.msk [vmem:[#allocation2 + $0xb0] sm:$0xff] %vm36_vm0, %v988_v22  ;;  %1085 = vst.msk [vmem:[#allocation2 + $0x1b0] sm:$0xff] %vm36_vm0, %v1020_v23  ;;  %v989_v34 = vadd.f32 %v802_v30, %v124_v20  ;;  %v1021_v35 = vadd.f32 %v930_v31, %v156_v21  ;;  %v804_v37 = vpop.f32.mrb[47].mxu0  ;;  %v932_v38 = vpop.f32.mrb[47].mxu1  ;;  %v2665_v21 = vld [vmem:[%s2803_s2] ss:$0 sm:$0xff] }
 0x182   :  { %v1323_v28 = vmax.f32 %v1259_v16, 0.0  ;;  %v1118_v32 = vld [vmem:[#allocation2 + $0xa0] sm:$0xff]  ;;  %1643 = vst.msk [vmem:[%s2805_s4 + $0x48] sm:$0xf] %vm1624_vm1, %v1858_v26  ;;  %1675 = vst.msk [vmem:[%s2805_s4 + $0xc8] sm:$0xf] %vm1624_vm1, %v1890_v27 }
 0x183   :  { %v1355_v29 = vmax.f32 %v1291_v17, 0.0  ;;  %v1150_v33 = vld [vmem:[#allocation2 + $0x1a0] sm:$0xff]  ;;  %v1189_v41 = vmul.f32 %v2340_v36, %v1118_v32  ;;  %v1119_v43 = vld [vmem:[#allocation2 + $0xa8] sm:$0xff]  ;;  %1054 = vst.msk [vmem:[#allocation2 + $0xb8] sm:$0xff] %vm36_vm0, %v989_v34  ;;  %1086 = vst.msk [vmem:[#allocation2 + $0x1b8] sm:$0xff] %vm36_vm0, %v1021_v35 }
 0x184   :  { %v1859_v39 = vpack.c.bf16 %v1323_v28, %v1323_v28  ;;  %v1221_v42 = vmul.f32 %v2340_v36, %v1150_v33  ;;  %v1151_v44 = vld [vmem:[#allocation2 + $0x1a8] sm:$0xff]  ;;  %v1190_v45 = vmul.f32 %v2340_v36, %v1119_v43  ;;  %v127_v27 = vld [vmem:[#allocation2 + $0xd0] sm:$0xff]  ;;  %v128_v37 = vld [vmem:[#allocation2 + $0xd8] sm:$0xff] }
 0x185   :  { %v1891_v40 = vpack.c.bf16 %v1355_v29, %v1355_v29  ;;  %v1222_v47 = vmul.f32 %v2340_v36, %v1151_v44  ;;  %v1260_v48 = vadd.f32 %v2345_v46, %v1189_v41  ;;  %v159_v28 = vld [vmem:[#allocation2 + $0x1d0] sm:$0xff]  ;;  %v160_v38 = vld [vmem:[#allocation2 + $0x1d8] sm:$0xff] }
 0x186   :  { %1644 = vst.msk [vmem:[%s2805_s4 + $0x4c] sm:$0xf] %vm1624_vm1, %v1859_v39  ;;  %v1292_v49 = vadd.f32 %v2345_v46, %v1221_v42  ;;  %v1261_v52 = vadd.f32 %v2345_v46, %v1190_v45  ;;  %v807_v56 = vpop.f32.mrb[48].mxu0  ;;  %v935_v57 = vpop.f32.mrb[48].mxu1 }
 0x187   :  { %1676 = vst.msk [vmem:[%s2805_s4 + $0xcc] sm:$0xf] %vm1624_vm1, %v1891_v40  ;;  %v1293_v53 = vadd.f32 %v2345_v46, %v1222_v47  ;;  %v1324_v54 = vmax.f32 %v1260_v48, 0.0  ;;  %v990_v60 = vadd.f32 %v807_v56, %v125_v50  ;;  %v1022_v61 = vadd.f32 %v935_v57, %v157_v51  ;;  %v809_v62 = vpop.f32.mrb[49].mxu0  ;;  %v937_v63 = vpop.f32.mrb[49].mxu1 }
 0x188   :  { %v1356_v55 = vmax.f32 %v1292_v49, 0.0  ;;  %v1325_v58 = vmax.f32 %v1261_v52, 0.0  ;;  %v1120_v4 = vld [vmem:[#allocation2 + $0xb0] sm:$0xff]  ;;  %v810_v6 = vpop.f32.mrb[50].mxu0  ;;  %v938_v7 = vpop.f32.mrb[50].mxu1 }
 0x189   :  { %v1357_v59 = vmax.f32 %v1293_v53, 0.0  ;;  %v1860_v2 = vpack.c.bf16 %v1324_v54, %v1324_v54  ;;  %v1152_v5 = vld [vmem:[#allocation2 + $0x1b0] sm:$0xff]  ;;  %v1191_v10 = vmul.f32 %v2340_v36, %v1120_v4  ;;  %1055 = vst.msk [vmem:[#allocation2 + $0xc0] sm:$0xff] %vm36_vm0, %v990_v60  ;;  %1087 = vst.msk [vmem:[#allocation2 + $0x1c0] sm:$0xff] %vm36_vm0, %v1022_v61  ;;  %v812_v12 = vpop.f32.mrb[51].mxu0  ;;  %v940_v13 = vpop.f32.mrb[51].mxu1  ;;  %v991_v16 = vadd.f32 %v810_v6, %v126_v0 }
 0x18a   :  { %v1892_v3 = vpack.c.bf16 %v1356_v55, %v1356_v55  ;;  %v1861_v8 = vpack.c.bf16 %v1325_v58, %v1325_v58  ;;  %v1223_v11 = vmul.f32 %v2340_v36, %v1152_v5  ;;  %v1121_v14 = vld [vmem:[#allocation2 + $0xb8] sm:$0xff]  ;;  %v1023_v17 = vadd.f32 %v938_v7, %v158_v1  ;;  %v2695_v53 = vld [vmem:[%s2804_s3] ss:$0 sm:$0xff]  ;;  %v130_v4 = vld [vmem:[#allocation2 + $0xe8] sm:$0xff] }
 0x18b   :  { %v1893_v9 = vpack.c.bf16 %v1357_v59, %v1357_v59  ;;  %1645 = vst.msk [vmem:[%s2805_s4 + $0x50] sm:$0xf] %vm1624_vm1, %v1860_v2  ;;  %v1153_v15 = vld [vmem:[#allocation2 + $0x1b8] sm:$0xff]  ;;  %v1262_v18 = vadd.f32 %v2345_v46, %v1191_v10  ;;  %v1192_v20 = vmul.f32 %v2340_v36, %v1121_v14  ;;  %v129_v60 = vld [vmem:[#allocation2 + $0xe0] sm:$0xff]  ;;  %v162_v5 = vld [vmem:[#allocation2 + $0x1e8] sm:$0xff] }
 0x18c   :  { %1677 = vst.msk [vmem:[%s2805_s4 + $0xd0] sm:$0xf] %vm1624_vm1, %v1892_v3  ;;  %1646 = vst.msk [vmem:[%s2805_s4 + $0x54] sm:$0xf] %vm1624_vm1, %v1861_v8  ;;  %v1294_v19 = vadd.f32 %v2345_v46, %v1223_v11  ;;  %v1224_v22 = vmul.f32 %v2665_v21, %v1153_v15  ;;  %v161_v61 = vld [vmem:[#allocation2 + $0x1e0] sm:$0xff] }
 0x18d   :  { %1678 = vst.msk [vmem:[%s2805_s4 + $0xd4] sm:$0xf] %vm1624_vm1, %v1893_v9  ;;  %v1326_v23 = vmax.f32 %v1262_v18, 0.0  ;;  %v1263_v25 = vadd.f32 %v2345_v46, %v1192_v20 }
 0x18e   :  { %1056 = vst.msk [vmem:[#allocation2 + $0xc8] sm:$0xff] %vm36_vm0, %v991_v16  ;;  %1088 = vst.msk [vmem:[#allocation2 + $0x1c8] sm:$0xff] %vm36_vm0, %v1023_v17  ;;  %v1358_v24 = vmax.f32 %v1294_v19, 0.0  ;;  %v1295_v26 = vadd.f32 %v2345_v46, %v1224_v22  ;;  %v815_v36 = vpop.f32.mrb[52].mxu0  ;;  %v943_v29 = vpop.f32.mrb[52].mxu1 }
 0x18f   :  { %v1862_v30 = vpack.c.bf16 %v1326_v23, %v1326_v23  ;;  %v1327_v32 = vmax.f32 %v1263_v25, 0.0  ;;  %v817_v34 = vpop.f32.mrb[53].mxu0  ;;  %v945_v35 = vpop.f32.mrb[53].mxu1  ;;  %v992_v41 = vadd.f32 %v815_v36, %v127_v27  ;;  %v1024_v42 = vadd.f32 %v943_v29, %v159_v28 }
 0x190   :  { %v1894_v31 = vpack.c.bf16 %v1358_v24, %v1358_v24  ;;  %v1359_v33 = vmax.f32 %v1295_v26, 0.0  ;;  %v1122_v39 = vld [vmem:[#allocation2 + $0xc0] sm:$0xff]  ;;  %v818_v43 = vpop.f32.mrb[54].mxu0  ;;  %v946_v44 = vpop.f32.mrb[54].mxu1 }
 0x191   :  { %v1154_v40 = vld [vmem:[#allocation2 + $0x1c0] sm:$0xff]  ;;  %1647 = vst.msk [vmem:[%s2805_s4 + $0x58] sm:$0xf] %vm1624_vm1, %v1862_v30  ;;  %v1863_v46 = vpack.c.bf16 %v1327_v32, %v1327_v32  ;;  %v1193_v47 = vmul.f32 %v2665_v21, %v1122_v39  ;;  %v820_v49 = vpop.f32.mrb[55].mxu0  ;;  %v948_v50 = vpop.f32.mrb[55].mxu1  ;;  %v993_v51 = vadd.f32 %v818_v43, %v128_v37  ;;  %v1025_v52 = vadd.f32 %v946_v44, %v160_v38  ;;  %v131_v32 = vld [vmem:[#allocation2 + $0xf0] sm:$0xff] }
 0x192   :  { %1679 = vst.msk [vmem:[%s2805_s4 + $0xd8] sm:$0xf] %vm1624_vm1, %v1894_v31  ;;  %v1895_v45 = vpack.c.bf16 %v1359_v33, %v1359_v33  ;;  %v1225_v48 = vmul.f32 %v2665_v21, %v1154_v40  ;;  %v163_v33 = vld [vmem:[#allocation2 + $0x1f0] sm:$0xff] }
 0x193   :  { %1057 = vst.msk [vmem:[#allocation2 + $0xd0] sm:$0xff] %vm36_vm0, %v992_v41  ;;  %1089 = vst.msk [vmem:[#allocation2 + $0x1d0] sm:$0xff] %vm36_vm0, %v1024_v42  ;;  %v1264_v54 = vadd.f32 %v2695_v53, %v1193_v47  ;;  %v132_v41 = vld [vmem:[#allocation2 + $0xf8] sm:$0xff] }
 0x194   :  { %1648 = vst.msk [vmem:[%s2805_s4 + $0x5c] sm:$0xf] %vm1624_vm1, %v1863_v46  ;;  %1680 = vst.msk [vmem:[%s2805_s4 + $0xdc] sm:$0xf] %vm1624_vm1, %v1895_v45  ;;  %v1296_v55 = vadd.f32 %v2695_v53, %v1225_v48  ;;  %v164_v42 = vld [vmem:[#allocation2 + $0x1f8] sm:$0xff] }
 0x195   :  { %v1123_v56 = vld [vmem:[#allocation2 + $0xc8] sm:$0xff]  ;;  %1058 = vst.msk [vmem:[#allocation2 + $0xd8] sm:$0xff] %vm36_vm0, %v993_v51  ;;  %1090 = vst.msk [vmem:[#allocation2 + $0x1d8] sm:$0xff] %vm36_vm0, %v1025_v52  ;;  %v1328_v62 = vmax.f32 %v1264_v54, 0.0 }
 0x196   :  { %v1155_v57 = vld [vmem:[#allocation2 + $0x1c8] sm:$0xff]  ;;  %v1194_v58 = vmul.f32 %v2665_v21, %v1123_v56  ;;  %v1360_v63 = vmax.f32 %v1296_v55, 0.0  ;;  %v823_v2 = vpop.f32.mrb[56].mxu0  ;;  %v951_v3 = vpop.f32.mrb[56].mxu1 }
 0x197   :  { %v1226_v59 = vmul.f32 %v2665_v21, %v1155_v57  ;;  %v1864_v6 = vpack.c.bf16 %v1328_v62, %v1328_v62  ;;  %v994_v8 = vadd.f32 %v823_v2, %v129_v60  ;;  %v1026_v9 = vadd.f32 %v951_v3, %v161_v61  ;;  %v825_v10 = vpop.f32.mrb[57].mxu0  ;;  %v953_v11 = vpop.f32.mrb[57].mxu1 }
 0x198   :  { %v1265_v0 = vadd.f32 %v2695_v53, %v1194_v58  ;;  %v1896_v7 = vpack.c.bf16 %v1360_v63, %v1360_v63  ;;  %v826_v14 = vpop.f32.mrb[58].mxu0  ;;  %v954_v15 = vpop.f32.mrb[58].mxu1 }
 0x199   :  { %v1297_v1 = vadd.f32 %v2695_v53, %v1226_v59  ;;  %1649 = vst.msk [vmem:[%s2805_s4 + $0x60] sm:$0xf] %vm1624_vm1, %v1864_v6  ;;  %v995_v18 = vadd.f32 %v826_v14, %v130_v4  ;;  %v1027_v19 = vadd.f32 %v954_v15, %v162_v5  ;;  %v828_v20 = vpop.f32.mrb[59].mxu0  ;;  %v956_v22 = vpop.f32.mrb[59].mxu1 }
 0x19a   :  { %v1329_v12 = vmax.f32 %v1265_v0, 0.0  ;;  %1681 = vst.msk [vmem:[%s2805_s4 + $0xe0] sm:$0xf] %vm1624_vm1, %v1896_v7  ;;  %v1124_v16 = vld [vmem:[#allocation2 + $0xd0] sm:$0xff] }
 0x19b   :  { %v1361_v13 = vmax.f32 %v1297_v1, 0.0  ;;  %v1156_v17 = vld [vmem:[#allocation2 + $0x1d0] sm:$0xff]  ;;  %1059 = vst.msk [vmem:[#allocation2 + $0xe0] sm:$0xff] %vm36_vm0, %v994_v8  ;;  %1091 = vst.msk [vmem:[#allocation2 + $0x1e0] sm:$0xff] %vm36_vm0, %v1026_v9  ;;  %v1195_v25 = vmul.f32 %v2665_v21, %v1124_v16 }
 0x19c   :  { %v1865_v23 = vpack.c.bf16 %v1329_v12, %v1329_v12  ;;  %v1227_v26 = vmul.f32 %v2665_v21, %v1156_v17  ;;  %v1125_v27 = vld [vmem:[#allocation2 + $0xd8] sm:$0xff]  ;;  %1060 = vst.msk [vmem:[#allocation2 + $0xe8] sm:$0xff] %vm36_vm0, %v995_v18  ;;  %1092 = vst.msk [vmem:[#allocation2 + $0x1e8] sm:$0xff] %vm36_vm0, %v1027_v19 }
 0x19d   :  { %v1897_v24 = vpack.c.bf16 %v1361_v13, %v1361_v13  ;;  %v1157_v28 = vld [vmem:[#allocation2 + $0x1d8] sm:$0xff]  ;;  %v1266_v36 = vadd.f32 %v2695_v53, %v1195_v25  ;;  %v1196_v30 = vmul.f32 %v2665_v21, %v1125_v27 }
 0x19e   :  { %1650 = vst.msk [vmem:[%s2805_s4 + $0x64] sm:$0xf] %vm1624_vm1, %v1865_v23  ;;  %v1298_v29 = vadd.f32 %v2695_v53, %v1227_v26  ;;  %v1228_v31 = vmul.f32 %v2665_v21, %v1157_v28  ;;  %v831_v39 = vpop.f32.mrb[60].mxu0  ;;  %v959_v40 = vpop.f32.mrb[60].mxu1 }
 0x19f   :  { %1682 = vst.msk [vmem:[%s2805_s4 + $0xe4] sm:$0xf] %vm1624_vm1, %v1897_v24  ;;  %v1330_v34 = vmax.f32 %v1266_v36, 0.0  ;;  %v1267_v37 = vadd.f32 %v2695_v53, %v1196_v30  ;;  %v996_v43 = vadd.f32 %v831_v39, %v131_v32  ;;  %v1028_v44 = vadd.f32 %v959_v40, %v163_v33  ;;  %v833_v46 = vpop.f32.mrb[61].mxu0  ;;  %v961_v45 = vpop.f32.mrb[61].mxu1 }
 0x1a0   :  { %v1362_v35 = vmax.f32 %v1298_v29, 0.0  ;;  %v1299_v38 = vadd.f32 %v2695_v53, %v1228_v31  ;;  %v834_v54 = vpop.f32.mrb[62].mxu0  ;;  %v962_v55 = vpop.f32.mrb[62].mxu1 }
 0x1a1   :  { %v1866_v47 = vpack.c.bf16 %v1330_v34, %v1330_v34  ;;  %v1331_v49 = vmax.f32 %v1267_v37, 0.0  ;;  %1061 = vst.msk [vmem:[#allocation2 + $0xf0] sm:$0xff] %vm36_vm0, %v996_v43  ;;  %1093 = vst.msk [vmem:[#allocation2 + $0x1f0] sm:$0xff] %vm36_vm0, %v1028_v44  ;;  %v997_v58 = vadd.f32 %v834_v54, %v132_v41  ;;  %v1029_v59 = vadd.f32 %v962_v55, %v164_v42  ;;  %v836_v60 = vpop.f32.mrb[63].mxu0  ;;  %v964_v61 = vpop.f32.mrb[63].mxu1 }
 0x1a2   :  { %v1898_v48 = vpack.c.bf16 %v1362_v35, %v1362_v35  ;;  %v1363_v50 = vmax.f32 %v1299_v38, 0.0  ;;  %v1126_v51 = vld [vmem:[#allocation2 + $0xe0] sm:$0xff] }
 0x1a3   :  { %v1158_v52 = vld [vmem:[#allocation2 + $0x1e0] sm:$0xff]  ;;  %v1197_v56 = vmul.f32 %v2665_v21, %v1126_v51  ;;  %1651 = vst.msk [vmem:[%s2805_s4 + $0x68] sm:$0xf] %vm1624_vm1, %v1866_v47  ;;  %v1867_v62 = vpack.c.bf16 %v1331_v49, %v1331_v49  ;;  %v1127_v0 = vld [vmem:[#allocation2 + $0xe8] sm:$0xff] }
 0x1a4   :  { %v1229_v57 = vmul.f32 %v2665_v21, %v1158_v52  ;;  %1683 = vst.msk [vmem:[%s2805_s4 + $0xe8] sm:$0xf] %vm1624_vm1, %v1898_v48  ;;  %v1899_v63 = vpack.c.bf16 %v1363_v50, %v1363_v50  ;;  %v1159_v1 = vld [vmem:[#allocation2 + $0x1e8] sm:$0xff]  ;;  %v1198_v4 = vmul.f32 %v2665_v21, %v1127_v0 }
 0x1a5   :  { %v1268_v2 = vadd.f32 %v2695_v53, %v1197_v56  ;;  %v1230_v5 = vmul.f32 %v2665_v21, %v1159_v1  ;;  %1062 = vst.msk [vmem:[#allocation2 + $0xf8] sm:$0xff] %vm36_vm0, %v997_v58  ;;  %1094 = vst.msk [vmem:[#allocation2 + $0x1f8] sm:$0xff] %vm36_vm0, %v1029_v59 }
 0x1a6   :  { %v1300_v3 = vadd.f32 %v2695_v53, %v1229_v57  ;;  %1652 = vst.msk [vmem:[%s2805_s4 + $0x6c] sm:$0xf] %vm1624_vm1, %v1867_v62  ;;  %1684 = vst.msk [vmem:[%s2805_s4 + $0xec] sm:$0xf] %vm1624_vm1, %v1899_v63  ;;  %v1269_v8 = vadd.f32 %v2695_v53, %v1198_v4 }
 0x1a7   :  { %v1332_v6 = vmax.f32 %v1268_v2, 0.0  ;;  %v1301_v9 = vadd.f32 %v2695_v53, %v1230_v5 }
 0x1a8   :  { %v1364_v7 = vmax.f32 %v1300_v3, 0.0  ;;  %v1333_v12 = vmax.f32 %v1269_v8, 0.0  ;;  %v1128_v14 = vld [vmem:[#allocation2 + $0xf0] sm:$0xff] }
 0x1a9   :  { %v1868_v10 = vpack.c.bf16 %v1332_v6, %v1332_v6  ;;  %v1365_v13 = vmax.f32 %v1301_v9, 0.0  ;;  %v1160_v15 = vld [vmem:[#allocation2 + $0x1f0] sm:$0xff]  ;;  %v1199_v18 = vmul.f32 %v2665_v21, %v1128_v14 }
 0x1aa   :  { %v1900_v11 = vpack.c.bf16 %v1364_v7, %v1364_v7  ;;  %v1869_v16 = vpack.c.bf16 %v1333_v12, %v1333_v12  ;;  %v1231_v19 = vmul.f32 %v2665_v21, %v1160_v15 }
 0x1ab   :  { %1653 = vst.msk [vmem:[%s2805_s4 + $0x70] sm:$0xf] %vm1624_vm1, %v1868_v10  ;;  %v1901_v17 = vpack.c.bf16 %v1365_v13, %v1365_v13  ;;  %v1270_v23 = vadd.f32 %v2695_v53, %v1199_v18 }
 0x1ac   :  { %1685 = vst.msk [vmem:[%s2805_s4 + $0xf0] sm:$0xf] %vm1624_vm1, %v1900_v11  ;;  %v1129_v20 = vld [vmem:[#allocation2 + $0xf8] sm:$0xff]  ;;  %1654 = vst.msk [vmem:[%s2805_s4 + $0x74] sm:$0xf] %vm1624_vm1, %v1869_v16  ;;  %v1302_v24 = vadd.f32 %v2695_v53, %v1231_v19 }
 0x1ad   :  { %v1161_v22 = vld [vmem:[#allocation2 + $0x1f8] sm:$0xff]  ;;  %1686 = vst.msk [vmem:[%s2805_s4 + $0xf4] sm:$0xf] %vm1624_vm1, %v1901_v17  ;;  %v1200_v25 = vmul.f32 %v2665_v21, %v1129_v20  ;;  %v1334_v27 = vmax.f32 %v1270_v23, 0.0 }
 0x1ae   :  { %v1232_v26 = vmul.f32 %v2665_v21, %v1161_v22  ;;  %v1366_v28 = vmax.f32 %v1302_v24, 0.0 }
 0x1af   :  { %v1271_v36 = vadd.f32 %v2695_v53, %v1200_v25  ;;  %v1870_v30 = vpack.c.bf16 %v1334_v27, %v1334_v27 }
 0x1b0   :  { %v1303_v29 = vadd.f32 %v2695_v53, %v1232_v26  ;;  %v1902_v31 = vpack.c.bf16 %v1366_v28, %v1366_v28 }
 0x1b1   :  { %v1335_v32 = vmax.f32 %v1271_v36, 0.0  ;;  %1655 = vst.msk [vmem:[%s2805_s4 + $0x78] sm:$0xf] %vm1624_vm1, %v1870_v30 }
 0x1b2   :  { %v1367_v33 = vmax.f32 %v1303_v29, 0.0  ;;  %1687 = vst.msk [vmem:[%s2805_s4 + $0xf8] sm:$0xf] %vm1624_vm1, %v1902_v31 }
 0x1b3   :  { %v1871_v21 = vpack.c.bf16 %v1335_v32, %v1335_v32 }
 0x1b4   :  { %v1903_v34 = vpack.c.bf16 %v1367_v33, %v1367_v33 }
 0x1b5   :  { %1656 = vst.msk [vmem:[%s2805_s4 + $0x7c] sm:$0xf] %vm1624_vm1, %v1871_v21 }
 0x1b6   :  { %1688 = vst.msk [vmem:[%s2805_s4 + $0xfc] sm:$0xf] %vm1624_vm1, %v1903_v34 }
 0x1b7   :  { %1693 = vsyncpa [#allocation4], 1 }

</bundles_post_ra>
